<compile_context>
chip_gen: v6e
topology: v6e:2x2x1
jax: 0.10.0
libtpu: 0.0.40
codegen_flags: <defaults>
</compile_context>

<pallas_src>
import functools

import jax
import jax.numpy as jnp
from jax import lax
from jax.experimental import pallas as pl
from jax.experimental.pallas import tpu as pltpu

_LANE = 128
_SUBLANE = 8
_SMALL_TABLE_BYTES = 12 * 1024 * 1024   # bulk-load threshold (< v5e's 16 MiB scoped VMEM)


# ---------------------------------------------------------------------------
# small padding / tiling helpers (all shape-static, run under jit)
# ---------------------------------------------------------------------------
def _round_up(x, m):
    return ((x + m - 1) // m) * m


def _pad2(a, rows, cols):
    if a.shape == (rows, cols):
        return a
    out = jnp.zeros((rows, cols), a.dtype)
    return out.at[: a.shape[0], : a.shape[1]].set(a)


def _pad_gru_weight_t(w, in_pad, H, H_pad):
    """(3H, in) PyTorch GRU weight (gate order r,z,n) -> (in_pad, 3*H_pad),
    transposed, each gate block padded independently."""
    wt = w.T
    out = jnp.zeros((in_pad, 3 * H_pad), w.dtype)
    for g in range(3):
        out = out.at[: wt.shape[0], g * H_pad : g * H_pad + H].set(
            wt[:, g * H : (g + 1) * H])
    return out


def _pad_gru_bias(b, H, H_pad):
    """(1, 3H) -> (1, 3*H_pad), per-gate padding."""
    out = jnp.zeros((1, 3 * H_pad), b.dtype)
    for g in range(3):
        out = out.at[:, g * H_pad : g * H_pad + H].set(b[:, g * H : (g + 1) * H])
    return out


def _pick_tile(n, candidates):
    for c in candidates:
        if n % c == 0:
            return c
    return n


# ---------------------------------------------------------------------------
# Kernel 1: embedding gather
# ---------------------------------------------------------------------------
def _embed_gather_kernel(ids_ref, table_ref, out_ref, *, ntok):
    # Table is VMEM-resident (one bulk DMA); each token is an aligned in-VMEM
    # row copy -- no per-token HBM DMA descriptors, no DMA semaphores.
    @pl.loop(0, ntok)
    def _(i):
        out_ref[pl.ds(i, 1), :] = table_ref[pl.ds(ids_ref[i], 1), :]


def _gather_embeddings_small(ids_tm, table, ntok_pad, E_pad):
    return pl.pallas_call(
        functools.partial(_embed_gather_kernel, ntok=ntok_pad),
        out_shape=jax.ShapeDtypeStruct((ntok_pad, E_pad), jnp.float32),
        in_specs=[pl.BlockSpec(memory_space=pltpu.MemorySpace.SMEM),
                  pl.BlockSpec(memory_space=pltpu.MemorySpace.VMEM)],
        out_specs=pl.BlockSpec(memory_space=pltpu.MemorySpace.VMEM),
    )(ids_tm, table)


def _gather_embeddings_large(ids_tm, table, ntok_pad, E_pad):
    # Large-vocab fallback: table stays in HBM, Pallas double-buffers one
    # (1, E_pad) row DMA per token via an Element-indexed BlockSpec.
    # TODO(synk): if this path matters, gather multiple rows per grid step.
    def gather_kernel(ids_ref, row_ref, out_ref):
        out_ref[...] = row_ref[...].reshape(1, 1, E_pad)

    out = pl.pallas_call(
        gather_kernel,
        out_shape=jax.ShapeDtypeStruct((ntok_pad, 1, E_pad), jnp.float32),
        grid_spec=pltpu.PrefetchScalarGridSpec(
            num_scalar_prefetch=1,
            grid=(ntok_pad,),
            in_specs=[pl.BlockSpec((pl.Element(1), E_pad),
                                   lambda i, ids: (ids[i], 0))],
            out_specs=pl.BlockSpec((1, 1, E_pad), lambda i, ids: (i, 0, 0)),
        ),
    )(ids_tm, table)
    return out.reshape(ntok_pad, E_pad)


# ---------------------------------------------------------------------------
# Kernel 2: fused gate precompute + GRU recurrence + LeakyReLU/skip/LayerNorm
# ---------------------------------------------------------------------------
def _gru_block_kernel(x_ref, w_big_ref, w_hh_ref, b_big_ref, b_hn_ref,
                      gamma_ref, beta_ref, h0_ref,
                      out_ref, hn_ref, gi_ref, *, B_pad, T, H, H_pad):
    f32 = jnp.float32
    Hp = H_pad

    # 1) one MXU pass over x: [r|z|n gate pre-activations | skip projection]
    gi_ref[...] = jnp.dot(x_ref[...], w_big_ref[...],
                          preferred_element_type=f32) + b_big_ref[...]

    # 2) GRU recurrence (PyTorch gate order r, z, n)
    w_hh = w_hh_ref[...]
    b_hn = b_hn_ref[...]

    def step(t, h):
        row = pl.multiple_of(t * B_pad, B_pad)          # B_pad % 8 == 0 -> aligned
        g_all = gi_ref[pl.ds(row, B_pad), :]            # (B_pad, 4*Hp)
        g_h = jnp.dot(h, w_hh, preferred_element_type=f32)   # (B_pad, 3*Hp)
        rz = jax.nn.sigmoid(g_all[:, : 2 * Hp] + g_h[:, : 2 * Hp])
        r = rz[:, :Hp]
        z = rz[:, Hp:]
        n = jnp.tanh(g_all[:, 2 * Hp : 3 * Hp] + r * (g_h[:, 2 * Hp :] + b_hn))
        h_new = (1.0 - z) * n + z * h
        out_ref[pl.ds(row, B_pad), :] = h_new           # stash raw GRU output
        return h_new

    h_last = lax.fori_loop(0, T, step, h0_ref[...], unroll=min(T, 8))
    hn_ref[...] = h_last

    # 3) epilogue: LeakyReLU + skip + LayerNorm.  Padded lanes of y are exactly
    #    zero by construction, so sum / sum-of-squares with a 1/H divisor give
    #    PyTorch's biased LayerNorm statistics over the real H lanes.
    h_all = out_ref[...]
    act = jnp.where(h_all >= 0, h_all, 0.01 * h_all)    # LeakyReLU(0.01)
    y = act + gi_ref[:, 3 * Hp :]                       # + skip projection
    inv_h = 1.0 / H
    mean = jnp.sum(y, axis=-1, keepdims=True) * inv_h
    var = jnp.sum(y * y, axis=-1, keepdims=True) * inv_h - mean * mean
    normed = (y - mean) * lax.rsqrt(var + 1e-5)
    out_ref[...] = normed * gamma_ref[...] + beta_ref[...]


# ---------------------------------------------------------------------------
# Kernel 3: output Linear (H -> V), 2-D parallel grid over (vocab, rows)
# ---------------------------------------------------------------------------
def _fc_kernel(x_ref, w_ref, b_ref, o_ref):
    o_ref[...] = jnp.dot(x_ref[...], w_ref[...],
                         preferred_element_type=jnp.float32) + b_ref[...]


# ---------------------------------------------------------------------------
# Wrapper
# ---------------------------------------------------------------------------
def first_model_forward(ids, params, hidden=None):
    B, T = ids.shape
    V, E = params["embedding"].shape
    H = params["w_hh"].shape[1]

    B_pad = _round_up(B, _SUBLANE)
    H_pad = _round_up(H, _LANE)
    E_pad = _round_up(E, _LANE)
    V_pad = _round_up(V, _LANE)
    ntok_pad = T * B_pad
    Hp = H_pad

    # initial hidden state (PyTorch shape (1, B, H); None -> zeros)
    if hidden is None:
        h0 = jnp.zeros((B_pad, H_pad), jnp.float32)
    else:
        h0 = _pad2(hidden.reshape(B, H).astype(jnp.float32), B_pad, H_pad)

    # ---- pad / transpose parameters to MXU-friendly, lane-dense layouts ----
    table = params["embedding"].astype(jnp.float32)
    if E_pad != E:
        table = _pad2(table, V, E_pad)                       # (V, E_pad)

    w_ih_t = _pad_gru_weight_t(params["w_ih"], E_pad, H, H_pad)   # (E_pad, 3Hp)
    w_hh_t = _pad_gru_weight_t(params["w_hh"], H_pad, H, H_pad)   # (H_pad, 3Hp)
    b_ih = _pad_gru_bias(params["b_ih"], H, H_pad)                # (1, 3Hp)
    b_hh = _pad_gru_bias(params["b_hh"], H, H_pad)                # (1, 3Hp)
    # fold recurrent r/z biases into the input-side precompute
    b_gi = jnp.concatenate([b_ih[:, : 2 * Hp] + b_hh[:, : 2 * Hp],
                            b_ih[:, 2 * Hp :]], axis=1)           # (1, 3Hp)
    b_hn = b_hh[:, 2 * Hp :]                                      # (1, Hp)

    w_skip_t = _pad2(params["w_skip"].T, E_pad, H_pad)            # (E_pad, Hp)
    b_skip = _pad2(params["b_skip"], 1, H_pad)
    w_big = jnp.concatenate([w_ih_t, w_skip_t], axis=1)           # (E_pad, 4Hp)
    b_big = jnp.concatenate([b_gi, b_skip], axis=1)               # (1, 4Hp)

    gamma = _pad2(params["gamma"], 1, H_pad)   # zero-padded lanes -> output 0
    beta = _pad2(params["beta"], 1, H_pad)

    w_fc_t = _pad2(params["w_fc"].T, H_pad, V_pad)                # (Hp, V_pad)
    b_fc = _pad2(params["b_fc"], 1, V_pad)
    # TODO(synk): optionally cast w_fc_t to bf16 (f32 accumulation) on
    # HBM-bandwidth-bound chips; kept f32 to match PyTorch numerics exactly.

    # ---- token ids: pad batch to 8 sublanes and flatten time-major ---------
    ids_p = jnp.zeros((B_pad, T), jnp.int32).at[:B, :].set(ids.astype(jnp.int32))
    ids_tm = jnp.swapaxes(ids_p, 0, 1).reshape(ntok_pad)

    # ---- kernel 1: embedding gather ----------------------------------------
    if V * E_pad * 4 <= _SMALL_TABLE_BYTES:
        embed_flat = _gather_embeddings_small(ids_tm, table, ntok_pad, E_pad)
    else:
        embed_flat = _gather_embeddings_large(ids_tm, table, ntok_pad, E_pad)

    # ---- kernel 2: gates matmul + GRU recurrence + LN epilogue -------------
    vmem = pl.BlockSpec(memory_space=pltpu.MemorySpace.VMEM)
    out_flat, hn_pad = pl.pallas_call(
        functools.partial(_gru_block_kernel, B_pad=B_pad, T=T, H=H, H_pad=H_pad),
        out_shape=(jax.ShapeDtypeStruct((ntok_pad, H_pad), jnp.float32),
                   jax.ShapeDtypeStruct((B_pad, H_pad), jnp.float32)),
        in_specs=[vmem] * 8,
        out_specs=(vmem, vmem),
        scratch_shapes=[pltpu.VMEM((ntok_pad, 4 * H_pad), jnp.float32)],
    )(embed_flat, w_big, w_hh_t, b_big, b_hn, gamma, beta, h0)
    # TODO(synk): for large T*B on v7x (64 MiB VMEM, 2 cores), chunk the gate
    # precompute / epilogue over T and grid the batch across cores.

    # ---- kernel 3: vocab projection, batch-major rows so the big logits
    #      tensor never needs an XLA transpose afterwards --------------------
    out_bm = jnp.swapaxes(out_flat.reshape(T, B_pad, H_pad), 0, 1
                          ).reshape(ntok_pad, H_pad)
    tm = _pick_tile(ntok_pad, (512, 256, 128, 64, 32, 16, 8))
    tn = _pick_tile(V_pad, (512, 256, 128))
    logits_flat = pl.pallas_call(
        _fc_kernel,
        out_shape=jax.ShapeDtypeStruct((ntok_pad, V_pad), jnp.float32),
        grid=(V_pad // tn, ntok_pad // tm),       # vocab outer -> w_fc streamed once
        in_specs=[pl.BlockSpec((tm, H_pad), lambda j, i: (i, 0)),
                  pl.BlockSpec((H_pad, tn), lambda j, i: (0, j)),
                  pl.BlockSpec((1, tn), lambda j, i: (0, j))],
        out_specs=pl.BlockSpec((tm, tn), lambda j, i: (i, j)),
        compiler_params=pltpu.CompilerParams(
            dimension_semantics=("parallel", "parallel")),
    )(out_bm, w_fc_t, b_fc)

    # ---- unpad / reshape to PyTorch output layouts --------------------------
    logits = logits_flat.reshape(B_pad, T, V_pad)[:B, :, :V]
    out = out_bm.reshape(B_pad, T, H_pad)[:B, :, :H]
    embed = jnp.swapaxes(embed_flat.reshape(T, B_pad, E_pad), 0, 1)[:B, :, :E]
    hn = hn_pad[:B, :H].reshape(1, B, H)
    return logits, out, hn, embed


def init_params(key, num_tokens, embedding_dim, hidden_size):
    V, E, H = num_tokens, embedding_dim, hidden_size
    ks = jax.random.split(key, 7)
    s = 0.1
    return {
        "embedding": jax.random.normal(ks[0], (V, E), jnp.float32),
        # GRU weights, PyTorch layout: (3H, in) with gate order (r, z, n)
        "w_ih": jax.random.normal(ks[1], (3 * H, E), jnp.float32) * s,
        "w_hh": jax.random.normal(ks[2], (3 * H, H), jnp.float32) * s,
        "b_ih": jax.random.normal(ks[3], (1, 3 * H), jnp.float32) * s,
        "b_hh": jax.random.normal(ks[4], (1, 3 * H), jnp.float32) * s,
        # skip projection Linear(E -> H)
        "w_skip": jax.random.normal(ks[5], (H, E), jnp.float32) * s,
        "b_skip": jnp.zeros((1, H), jnp.float32),
        # LayerNorm(H): PyTorch default init
        "gamma": jnp.ones((1, H), jnp.float32),
        "beta": jnp.zeros((1, H), jnp.float32),
        # output Linear(H -> V)
        "w_fc": jax.random.normal(ks[6], (V, H), jnp.float32) * s,
        "b_fc": jnp.zeros((1, V), jnp.float32),
    }


if __name__ == "__main__":
    key = jax.random.PRNGKey(0)
    B, T = 2, 8
    num_tokens, embedding_dim, hidden_size = 64, 16, 32

    pkey, dkey = jax.random.split(key)
    params = init_params(pkey, num_tokens, embedding_dim, hidden_size)
    ids = jax.random.randint(dkey, (B, T), 0, num_tokens, dtype=jnp.int32)

    fwd = jax.jit(first_model_forward)
    logits, out, hidden_new, embed = fwd(ids, params)
    jax.block_until_ready((logits, out, hidden_new, embed))

    assert logits.shape == (B, T, num_tokens)
    assert out.shape == (B, T, hidden_size)
    assert hidden_new.shape == (1, B, hidden_size)
    assert embed.shape == (B, T, embedding_dim)
    assert bool(jnp.all(jnp.isfinite(logits)))
    assert bool(jnp.all(jnp.isfinite(out)))
    assert bool(jnp.all(jnp.isfinite(hidden_new)))
    print("KERNEL_OK")
</pallas_src>

<mosaic_0001>
module attributes {stable_mosaic.version = 11 : i64} {
  func.func @_embed_gather_kernel(%arg0: memref<64xi32, #tpu.memory_space<smem>>, %arg1: memref<64x128xf32, #tpu.memory_space<vmem>>, %arg2: memref<64x128xf32, #tpu.memory_space<vmem>>) attributes {dimension_semantics = [], scalar_prefetch = 0 : i64, scratch_operands = 0 : i64, tpu.core_type = #tpu.core_type<tc>} {
    %c0_i32 = arith.constant 0 : i32
    %c64_i32 = arith.constant 64 : i32
    %0 = arith.addi %c0_i32, %c64_i32 : i32
    %c1_i32 = arith.constant 1 : i32
    scf.for %arg3 = %c0_i32 to %0 step %c1_i32  : i32 {
      %c1_i32_1 = arith.constant 1 : i32
      %1 = arith.muli %arg3, %c1_i32_1 : i32
      %c0_i32_2 = arith.constant 0 : i32
      %2 = arith.addi %c0_i32_2, %1 : i32
      %3 = arith.index_cast %2 : i32 to index
      %4 = memref.load %arg0[%3] : memref<64xi32, #tpu.memory_space<smem>>
      %5 = arith.index_cast %4 : i32 to index
      %c0 = arith.constant 0 : index
      %6 = vector.load %arg1[%5, %c0] : memref<64x128xf32, #tpu.memory_space<vmem>>, vector<1x128xf32>
      %7 = arith.index_cast %2 : i32 to index
      %c0_3 = arith.constant 0 : index
      %8 = vector.load %arg2[%7, %c0_3] : memref<64x128xf32, #tpu.memory_space<vmem>>, vector<1x128xf32>
      tpu.vector_store %arg2[%7, %c0_3], %6 {strides = array<i32>} : memref<64x128xf32, #tpu.memory_space<vmem>>, vector<1x128xf32>,
    }
    %c64_i32_0 = arith.constant 64 : i32
    return
  }
}

module attributes {stable_mosaic.version = 11 : i64} {
  func.func @_gru_block_kernel(%arg0: memref<64x128xf32, #tpu.memory_space<vmem>>, %arg1: memref<128x512xf32, #tpu.memory_space<vmem>>, %arg2: memref<128x384xf32, #tpu.memory_space<vmem>>, %arg3: memref<1x512xf32, #tpu.memory_space<vmem>>, %arg4: memref<1x128xf32, #tpu.memory_space<vmem>>, %arg5: memref<1x128xf32, #tpu.memory_space<vmem>>, %arg6: memref<1x128xf32, #tpu.memory_space<vmem>>, %arg7: memref<8x128xf32, #tpu.memory_space<vmem>>, %arg8: memref<64x128xf32, #tpu.memory_space<vmem>>, %arg9: memref<8x128xf32, #tpu.memory_space<vmem>>, %arg10: memref<64x512xf32, #tpu.memory_space<vmem>>) attributes {dimension_semantics = [], scalar_prefetch = 0 : i64, scratch_operands = 1 : i64, tpu.core_type = #tpu.core_type<tc>} {
    %c0 = arith.constant 0 : index
    %c0_0 = arith.constant 0 : index
    %0 = vector.load %arg0[%c0, %c0_0] : memref<64x128xf32, #tpu.memory_space<vmem>>, vector<64x128xf32>
    %c0_1 = arith.constant 0 : index
    %c0_2 = arith.constant 0 : index
    %1 = vector.load %arg1[%c0_1, %c0_2] : memref<128x512xf32, #tpu.memory_space<vmem>>, vector<128x512xf32>
    %cst = arith.constant dense<0.000000e+00> : vector<64x512xf32>
    %2 = tpu.matmul %0, %1, %cst {dimension_numbers = #tpu.dot_dimension_numbers<[1], [0], [0], [1], [0, 0, 1, 1], [], []>} : vector<64x128xf32>, vector<128x512xf32>, vector<64x512xf32> -> vector<64x512xf32>
    %c0_3 = arith.constant 0 : index
    %c0_4 = arith.constant 0 : index
    %3 = vector.load %arg3[%c0_3, %c0_4] : memref<1x512xf32, #tpu.memory_space<vmem>>, vector<1x512xf32>
    %4 = vector.broadcast %3 : vector<1x512xf32> to vector<64x512xf32>
    %5 = arith.addf %2, %4 : vector<64x512xf32>
    %c0_5 = arith.constant 0 : index
    %c0_6 = arith.constant 0 : index
    %6 = vector.load %arg10[%c0_5, %c0_6] : memref<64x512xf32, #tpu.memory_space<vmem>>, vector<64x512xf32>
    tpu.vector_store %arg10[%c0_5, %c0_6], %5 {strides = array<i32>} : memref<64x512xf32, #tpu.memory_space<vmem>>, vector<64x512xf32>,
    %c0_7 = arith.constant 0 : index
    %c0_8 = arith.constant 0 : index
    %7 = vector.load %arg2[%c0_7, %c0_8] : memref<128x384xf32, #tpu.memory_space<vmem>>, vector<128x384xf32>
    %c0_9 = arith.constant 0 : index
    %c0_10 = arith.constant 0 : index
    %8 = vector.load %arg4[%c0_9, %c0_10] : memref<1x128xf32, #tpu.memory_space<vmem>>, vector<1x128xf32>
    %c0_11 = arith.constant 0 : index
    %c0_12 = arith.constant 0 : index
    %9 = vector.load %arg7[%c0_11, %c0_12] : memref<8x128xf32, #tpu.memory_space<vmem>>, vector<8x128xf32>
    %c0_i32 = arith.constant 0 : i32
    %c8_i32 = arith.constant 8 : i32
    %10 = arith.muli %c0_i32, %c8_i32 : i32
    %11 = tpu.assume_multiple %10, 8 : i32
    %12 = arith.index_cast %11 : i32 to index
    %c0_13 = arith.constant 0 : index
    %13 = vector.load %arg10[%12, %c0_13] : memref<64x512xf32, #tpu.memory_space<vmem>>, vector<8x512xf32>
    %cst_14 = arith.constant dense<0.000000e+00> : vector<8x384xf32>
    %14 = tpu.matmul %9, %7, %cst_14 {dimension_numbers = #tpu.dot_dimension_numbers<[1], [0], [0], [1], [0, 0, 1, 1], [], []>} : vector<8x128xf32>, vector<128x384xf32>, vector<8x384xf32> -> vector<8x384xf32>
    %15 = vector.extract_strided_slice %13 {offsets = [0, 0], sizes = [8, 256], strides = [1, 1]} : vector<8x512xf32> to vector<8x256xf32>
    %16 = vector.extract_strided_slice %14 {offsets = [0, 0], sizes = [8, 256], strides = [1, 1]} : vector<8x384xf32> to vector<8x256xf32>
    %17 = arith.addf %15, %16 : vector<8x256xf32>
    %18 = arith.negf %17 : vector<8x256xf32>
    %19 = math.exp %18 : vector<8x256xf32>
    %cst_15 = arith.constant 1.000000e+00 : f32
    %20 = vector.broadcast %cst_15 : f32 to vector<8x256xf32>
    %21 = arith.addf %20, %19 : vector<8x256xf32>
    %22 = arith.divf %20, %21 : vector<8x256xf32>
    %23 = vector.extract_strided_slice %22 {offsets = [0, 0], sizes = [8, 128], strides = [1, 1]} : vector<8x256xf32> to vector<8x128xf32>
    %24 = vector.extract_strided_slice %22 {offsets = [0, 128], sizes = [8, 128], strides = [1, 1]} : vector<8x256xf32> to vector<8x128xf32>
    %25 = vector.extract_strided_slice %13 {offsets = [0, 256], sizes = [8, 128], strides = [1, 1]} : vector<8x512xf32> to vector<8x128xf32>
    %26 = vector.extract_strided_slice %14 {offsets = [0, 256], sizes = [8, 128], strides = [1, 1]} : vector<8x384xf32> to vector<8x128xf32>
    %27 = vector.broadcast %8 : vector<1x128xf32> to vector<8x128xf32>
    %28 = arith.addf %26, %27 : vector<8x128xf32>
    %29 = arith.mulf %23, %28 : vector<8x128xf32>
    %30 = arith.addf %25, %29 : vector<8x128xf32>
    %31 = math.tanh %30 : vector<8x128xf32>
    %cst_16 = arith.constant 1.000000e+00 : f32
    %32 = vector.broadcast %cst_16 : f32 to vector<8x128xf32>
    %33 = arith.subf %32, %24 : vector<8x128xf32>
    %34 = arith.mulf %33, %31 : vector<8x128xf32>
    %35 = arith.mulf %24, %9 : vector<8x128xf32>
    %36 = arith.addf %34, %35 : vector<8x128xf32>
    %37 = arith.index_cast %11 : i32 to index
    %c0_17 = arith.constant 0 : index
    %38 = vector.load %arg8[%37, %c0_17] : memref<64x128xf32, #tpu.memory_space<vmem>>, vector<8x128xf32>
    tpu.vector_store %arg8[%37, %c0_17], %36 {strides = array<i32>} : memref<64x128xf32, #tpu.memory_space<vmem>>, vector<8x128xf32>,
    %c1_i32 = arith.constant 1 : i32
    %c8_i32_18 = arith.constant 8 : i32
    %39 = arith.muli %c1_i32, %c8_i32_18 : i32
    %40 = tpu.assume_multiple %39, 8 : i32
    %41 = arith.index_cast %40 : i32 to index
    %c0_19 = arith.constant 0 : index
    %42 = vector.load %arg10[%41, %c0_19] : memref<64x512xf32, #tpu.memory_space<vmem>>, vector<8x512xf32>
    %cst_20 = arith.constant dense<0.000000e+00> : vector<8x384xf32>
    %43 = tpu.matmul %36, %7, %cst_20 {dimension_numbers = #tpu.dot_dimension_numbers<[1], [0], [0], [1], [0, 0, 1, 1], [], []>} : vector<8x128xf32>, vector<128x384xf32>, vector<8x384xf32> -> vector<8x384xf32>
    %44 = vector.extract_strided_slice %42 {offsets = [0, 0], sizes = [8, 256], strides = [1, 1]} : vector<8x512xf32> to vector<8x256xf32>
    %45 = vector.extract_strided_slice %43 {offsets = [0, 0], sizes = [8, 256], strides = [1, 1]} : vector<8x384xf32> to vector<8x256xf32>
    %46 = arith.addf %44, %45 : vector<8x256xf32>
    %47 = arith.negf %46 : vector<8x256xf32>
    %48 = math.exp %47 : vector<8x256xf32>
    %cst_21 = arith.constant 1.000000e+00 : f32
    %49 = vector.broadcast %cst_21 : f32 to vector<8x256xf32>
    %50 = arith.addf %49, %48 : vector<8x256xf32>
    %51 = arith.divf %49, %50 : vector<8x256xf32>
    %52 = vector.extract_strided_slice %51 {offsets = [0, 0], sizes = [8, 128], strides = [1, 1]} : vector<8x256xf32> to vector<8x128xf32>
    %53 = vector.extract_strided_slice %51 {offsets = [0, 128], sizes = [8, 128], strides = [1, 1]} : vector<8x256xf32> to vector<8x128xf32>
    %54 = vector.extract_strided_slice %42 {offsets = [0, 256], sizes = [8, 128], strides = [1, 1]} : vector<8x512xf32> to vector<8x128xf32>
    %55 = vector.extract_strided_slice %43 {offsets = [0, 256], sizes = [8, 128], strides = [1, 1]} : vector<8x384xf32> to vector<8x128xf32>
    %56 = vector.broadcast %8 : vector<1x128xf32> to vector<8x128xf32>
    %57 = arith.addf %55, %56 : vector<8x128xf32>
    %58 = arith.mulf %52, %57 : vector<8x128xf32>
    %59 = arith.addf %54, %58 : vector<8x128xf32>
    %60 = math.tanh %59 : vector<8x128xf32>
    %cst_22 = arith.constant 1.000000e+00 : f32
    %61 = vector.broadcast %cst_22 : f32 to vector<8x128xf32>
    %62 = arith.subf %61, %53 : vector<8x128xf32>
    %63 = arith.mulf %62, %60 : vector<8x128xf32>
    %64 = arith.mulf %53, %36 : vector<8x128xf32>
    %65 = arith.addf %63, %64 : vector<8x128xf32>
    %66 = arith.index_cast %40 : i32 to index
    %c0_23 = arith.constant 0 : index
    %67 = vector.load %arg8[%66, %c0_23] : memref<64x128xf32, #tpu.memory_space<vmem>>, vector<8x128xf32>
    tpu.vector_store %arg8[%66, %c0_23], %65 {strides = array<i32>} : memref<64x128xf32, #tpu.memory_space<vmem>>, vector<8x128xf32>,
    %c2_i32 = arith.constant 2 : i32
    %c8_i32_24 = arith.constant 8 : i32
    %68 = arith.muli %c2_i32, %c8_i32_24 : i32
    %69 = tpu.assume_multiple %68, 8 : i32
    %70 = arith.index_cast %69 : i32 to index
    %c0_25 = arith.constant 0 : index
    %71 = vector.load %arg10[%70, %c0_25] : memref<64x512xf32, #tpu.memory_space<vmem>>, vector<8x512xf32>
    %cst_26 = arith.constant dense<0.000000e+00> : vector<8x384xf32>
    %72 = tpu.matmul %65, %7, %cst_26 {dimension_numbers = #tpu.dot_dimension_numbers<[1], [0], [0], [1], [0, 0, 1, 1], [], []>} : vector<8x128xf32>, vector<128x384xf32>, vector<8x384xf32> -> vector<8x384xf32>
    %73 = vector.extract_strided_slice %71 {offsets = [0, 0], sizes = [8, 256], strides = [1, 1]} : vector<8x512xf32> to vector<8x256xf32>
    %74 = vector.extract_strided_slice %72 {offsets = [0, 0], sizes = [8, 256], strides = [1, 1]} : vector<8x384xf32> to vector<8x256xf32>
    %75 = arith.addf %73, %74 : vector<8x256xf32>
    %76 = arith.negf %75 : vector<8x256xf32>
    %77 = math.exp %76 : vector<8x256xf32>
    %cst_27 = arith.constant 1.000000e+00 : f32
    %78 = vector.broadcast %cst_27 : f32 to vector<8x256xf32>
    %79 = arith.addf %78, %77 : vector<8x256xf32>
    %80 = arith.divf %78, %79 : vector<8x256xf32>
    %81 = vector.extract_strided_slice %80 {offsets = [0, 0], sizes = [8, 128], strides = [1, 1]} : vector<8x256xf32> to vector<8x128xf32>
    %82 = vector.extract_strided_slice %80 {offsets = [0, 128], sizes = [8, 128], strides = [1, 1]} : vector<8x256xf32> to vector<8x128xf32>
    %83 = vector.extract_strided_slice %71 {offsets = [0, 256], sizes = [8, 128], strides = [1, 1]} : vector<8x512xf32> to vector<8x128xf32>
    %84 = vector.extract_strided_slice %72 {offsets = [0, 256], sizes = [8, 128], strides = [1, 1]} : vector<8x384xf32> to vector<8x128xf32>
    %85 = vector.broadcast %8 : vector<1x128xf32> to vector<8x128xf32>
    %86 = arith.addf %84, %85 : vector<8x128xf32>
    %87 = arith.mulf %81, %86 : vector<8x128xf32>
    %88 = arith.addf %83, %87 : vector<8x128xf32>
    %89 = math.tanh %88 : vector<8x128xf32>
    %cst_28 = arith.constant 1.000000e+00 : f32
    %90 = vector.broadcast %cst_28 : f32 to vector<8x128xf32>
    %91 = arith.subf %90, %82 : vector<8x128xf32>
    %92 = arith.mulf %91, %89 : vector<8x128xf32>
    %93 = arith.mulf %82, %65 : vector<8x128xf32>
    %94 = arith.addf %92, %93 : vector<8x128xf32>
    %95 = arith.index_cast %69 : i32 to index
    %c0_29 = arith.constant 0 : index
    %96 = vector.load %arg8[%95, %c0_29] : memref<64x128xf32, #tpu.memory_space<vmem>>, vector<8x128xf32>
    tpu.vector_store %arg8[%95, %c0_29], %94 {strides = array<i32>} : memref<64x128xf32, #tpu.memory_space<vmem>>, vector<8x128xf32>,
    %c3_i32 = arith.constant 3 : i32
    %c8_i32_30 = arith.constant 8 : i32
    %97 = arith.muli %c3_i32, %c8_i32_30 : i32
    %98 = tpu.assume_multiple %97, 8 : i32
    %99 = arith.index_cast %98 : i32 to index
    %c0_31 = arith.constant 0 : index
    %100 = vector.load %arg10[%99, %c0_31] : memref<64x512xf32, #tpu.memory_space<vmem>>, vector<8x512xf32>
    %cst_32 = arith.constant dense<0.000000e+00> : vector<8x384xf32>
    %101 = tpu.matmul %94, %7, %cst_32 {dimension_numbers = #tpu.dot_dimension_numbers<[1], [0], [0], [1], [0, 0, 1, 1], [], []>} : vector<8x128xf32>, vector<128x384xf32>, vector<8x384xf32> -> vector<8x384xf32>
    %102 = vector.extract_strided_slice %100 {offsets = [0, 0], sizes = [8, 256], strides = [1, 1]} : vector<8x512xf32> to vector<8x256xf32>
    %103 = vector.extract_strided_slice %101 {offsets = [0, 0], sizes = [8, 256], strides = [1, 1]} : vector<8x384xf32> to vector<8x256xf32>
    %104 = arith.addf %102, %103 : vector<8x256xf32>
    %105 = arith.negf %104 : vector<8x256xf32>
    %106 = math.exp %105 : vector<8x256xf32>
    %cst_33 = arith.constant 1.000000e+00 : f32
    %107 = vector.broadcast %cst_33 : f32 to vector<8x256xf32>
    %108 = arith.addf %107, %106 : vector<8x256xf32>
    %109 = arith.divf %107, %108 : vector<8x256xf32>
    %110 = vector.extract_strided_slice %109 {offsets = [0, 0], sizes = [8, 128], strides = [1, 1]} : vector<8x256xf32> to vector<8x128xf32>
    %111 = vector.extract_strided_slice %109 {offsets = [0, 128], sizes = [8, 128], strides = [1, 1]} : vector<8x256xf32> to vector<8x128xf32>
    %112 = vector.extract_strided_slice %100 {offsets = [0, 256], sizes = [8, 128], strides = [1, 1]} : vector<8x512xf32> to vector<8x128xf32>
    %113 = vector.extract_strided_slice %101 {offsets = [0, 256], sizes = [8, 128], strides = [1, 1]} : vector<8x384xf32> to vector<8x128xf32>
    %114 = vector.broadcast %8 : vector<1x128xf32> to vector<8x128xf32>
    %115 = arith.addf %113, %114 : vector<8x128xf32>
    %116 = arith.mulf %110, %115 : vector<8x128xf32>
    %117 = arith.addf %112, %116 : vector<8x128xf32>
    %118 = math.tanh %117 : vector<8x128xf32>
    %cst_34 = arith.constant 1.000000e+00 : f32
    %119 = vector.broadcast %cst_34 : f32 to vector<8x128xf32>
    %120 = arith.subf %119, %111 : vector<8x128xf32>
    %121 = arith.mulf %120, %118 : vector<8x128xf32>
    %122 = arith.mulf %111, %94 : vector<8x128xf32>
    %123 = arith.addf %121, %122 : vector<8x128xf32>
    %124 = arith.index_cast %98 : i32 to index
    %c0_35 = arith.constant 0 : index
    %125 = vector.load %arg8[%124, %c0_35] : memref<64x128xf32, #tpu.memory_space<vmem>>, vector<8x128xf32>
    tpu.vector_store %arg8[%124, %c0_35], %123 {strides = array<i32>} : memref<64x128xf32, #tpu.memory_space<vmem>>, vector<8x128xf32>,
    %c4_i32 = arith.constant 4 : i32
    %c8_i32_36 = arith.constant 8 : i32
    %126 = arith.muli %c4_i32, %c8_i32_36 : i32
    %127 = tpu.assume_multiple %126, 8 : i32
    %128 = arith.index_cast %127 : i32 to index
    %c0_37 = arith.constant 0 : index
    %129 = vector.load %arg10[%128, %c0_37] : memref<64x512xf32, #tpu.memory_space<vmem>>, vector<8x512xf32>
    %cst_38 = arith.constant dense<0.000000e+00> : vector<8x384xf32>
    %130 = tpu.matmul %123, %7, %cst_38 {dimension_numbers = #tpu.dot_dimension_numbers<[1], [0], [0], [1], [0, 0, 1, 1], [], []>} : vector<8x128xf32>, vector<128x384xf32>, vector<8x384xf32> -> vector<8x384xf32>
    %131 = vector.extract_strided_slice %129 {offsets = [0, 0], sizes = [8, 256], strides = [1, 1]} : vector<8x512xf32> to vector<8x256xf32>
    %132 = vector.extract_strided_slice %130 {offsets = [0, 0], sizes = [8, 256], strides = [1, 1]} : vector<8x384xf32> to vector<8x256xf32>
    %133 = arith.addf %131, %132 : vector<8x256xf32>
    %134 = arith.negf %133 : vector<8x256xf32>
    %135 = math.exp %134 : vector<8x256xf32>
    %cst_39 = arith.constant 1.000000e+00 : f32
    %136 = vector.broadcast %cst_39 : f32 to vector<8x256xf32>
    %137 = arith.addf %136, %135 : vector<8x256xf32>
    %138 = arith.divf %136, %137 : vector<8x256xf32>
    %139 = vector.extract_strided_slice %138 {offsets = [0, 0], sizes = [8, 128], strides = [1, 1]} : vector<8x256xf32> to vector<8x128xf32>
    %140 = vector.extract_strided_slice %138 {offsets = [0, 128], sizes = [8, 128], strides = [1, 1]} : vector<8x256xf32> to vector<8x128xf32>
    %141 = vector.extract_strided_slice %129 {offsets = [0, 256], sizes = [8, 128], strides = [1, 1]} : vector<8x512xf32> to vector<8x128xf32>
    %142 = vector.extract_strided_slice %130 {offsets = [0, 256], sizes = [8, 128], strides = [1, 1]} : vector<8x384xf32> to vector<8x128xf32>
    %143 = vector.broadcast %8 : vector<1x128xf32> to vector<8x128xf32>
    %144 = arith.addf %142, %143 : vector<8x128xf32>
    %145 = arith.mulf %139, %144 : vector<8x128xf32>
    %146 = arith.addf %141, %145 : vector<8x128xf32>
    %147 = math.tanh %146 : vector<8x128xf32>
    %cst_40 = arith.constant 1.000000e+00 : f32
    %148 = vector.broadcast %cst_40 : f32 to vector<8x128xf32>
    %149 = arith.subf %148, %140 : vector<8x128xf32>
    %150 = arith.mulf %149, %147 : vector<8x128xf32>
    %151 = arith.mulf %140, %123 : vector<8x128xf32>
    %152 = arith.addf %150, %151 : vector<8x128xf32>
    %153 = arith.index_cast %127 : i32 to index
    %c0_41 = arith.constant 0 : index
    %154 = vector.load %arg8[%153, %c0_41] : memref<64x128xf32, #tpu.memory_space<vmem>>, vector<8x128xf32>
    tpu.vector_store %arg8[%153, %c0_41], %152 {strides = array<i32>} : memref<64x128xf32, #tpu.memory_space<vmem>>, vector<8x128xf32>,
    %c5_i32 = arith.constant 5 : i32
    %c8_i32_42 = arith.constant 8 : i32
    %155 = arith.muli %c5_i32, %c8_i32_42 : i32
    %156 = tpu.assume_multiple %155, 8 : i32
    %157 = arith.index_cast %156 : i32 to index
    %c0_43 = arith.constant 0 : index
    %158 = vector.load %arg10[%157, %c0_43] : memref<64x512xf32, #tpu.memory_space<vmem>>, vector<8x512xf32>
    %cst_44 = arith.constant dense<0.000000e+00> : vector<8x384xf32>
    %159 = tpu.matmul %152, %7, %cst_44 {dimension_numbers = #tpu.dot_dimension_numbers<[1], [0], [0], [1], [0, 0, 1, 1], [], []>} : vector<8x128xf32>, vector<128x384xf32>, vector<8x384xf32> -> vector<8x384xf32>
    %160 = vector.extract_strided_slice %158 {offsets = [0, 0], sizes = [8, 256], strides = [1, 1]} : vector<8x512xf32> to vector<8x256xf32>
    %161 = vector.extract_strided_slice %159 {offsets = [0, 0], sizes = [8, 256], strides = [1, 1]} : vector<8x384xf32> to vector<8x256xf32>
    %162 = arith.addf %160, %161 : vector<8x256xf32>
    %163 = arith.negf %162 : vector<8x256xf32>
    %164 = math.exp %163 : vector<8x256xf32>
    %cst_45 = arith.constant 1.000000e+00 : f32
    %165 = vector.broadcast %cst_45 : f32 to vector<8x256xf32>
    %166 = arith.addf %165, %164 : vector<8x256xf32>
    %167 = arith.divf %165, %166 : vector<8x256xf32>
    %168 = vector.extract_strided_slice %167 {offsets = [0, 0], sizes = [8, 128], strides = [1, 1]} : vector<8x256xf32> to vector<8x128xf32>
    %169 = vector.extract_strided_slice %167 {offsets = [0, 128], sizes = [8, 128], strides = [1, 1]} : vector<8x256xf32> to vector<8x128xf32>
    %170 = vector.extract_strided_slice %158 {offsets = [0, 256], sizes = [8, 128], strides = [1, 1]} : vector<8x512xf32> to vector<8x128xf32>
    %171 = vector.extract_strided_slice %159 {offsets = [0, 256], sizes = [8, 128], strides = [1, 1]} : vector<8x384xf32> to vector<8x128xf32>
    %172 = vector.broadcast %8 : vector<1x128xf32> to vector<8x128xf32>
    %173 = arith.addf %171, %172 : vector<8x128xf32>
    %174 = arith.mulf %168, %173 : vector<8x128xf32>
    %175 = arith.addf %170, %174 : vector<8x128xf32>
    %176 = math.tanh %175 : vector<8x128xf32>
    %cst_46 = arith.constant 1.000000e+00 : f32
    %177 = vector.broadcast %cst_46 : f32 to vector<8x128xf32>
    %178 = arith.subf %177, %169 : vector<8x128xf32>
    %179 = arith.mulf %178, %176 : vector<8x128xf32>
    %180 = arith.mulf %169, %152 : vector<8x128xf32>
    %181 = arith.addf %179, %180 : vector<8x128xf32>
    %182 = arith.index_cast %156 : i32 to index
    %c0_47 = arith.constant 0 : index
    %183 = vector.load %arg8[%182, %c0_47] : memref<64x128xf32, #tpu.memory_space<vmem>>, vector<8x128xf32>
    tpu.vector_store %arg8[%182, %c0_47], %181 {strides = array<i32>} : memref<64x128xf32, #tpu.memory_space<vmem>>, vector<8x128xf32>,
    %c6_i32 = arith.constant 6 : i32
    %c8_i32_48 = arith.constant 8 : i32
    %184 = arith.muli %c6_i32, %c8_i32_48 : i32
    %185 = tpu.assume_multiple %184, 8 : i32
    %186 = arith.index_cast %185 : i32 to index
    %c0_49 = arith.constant 0 : index
    %187 = vector.load %arg10[%186, %c0_49] : memref<64x512xf32, #tpu.memory_space<vmem>>, vector<8x512xf32>
    %cst_50 = arith.constant dense<0.000000e+00> : vector<8x384xf32>
    %188 = tpu.matmul %181, %7, %cst_50 {dimension_numbers = #tpu.dot_dimension_numbers<[1], [0], [0], [1], [0, 0, 1, 1], [], []>} : vector<8x128xf32>, vector<128x384xf32>, vector<8x384xf32> -> vector<8x384xf32>
    %189 = vector.extract_strided_slice %187 {offsets = [0, 0], sizes = [8, 256], strides = [1, 1]} : vector<8x512xf32> to vector<8x256xf32>
    %190 = vector.extract_strided_slice %188 {offsets = [0, 0], sizes = [8, 256], strides = [1, 1]} : vector<8x384xf32> to vector<8x256xf32>
    %191 = arith.addf %189, %190 : vector<8x256xf32>
    %192 = arith.negf %191 : vector<8x256xf32>
    %193 = math.exp %192 : vector<8x256xf32>
    %cst_51 = arith.constant 1.000000e+00 : f32
    %194 = vector.broadcast %cst_51 : f32 to vector<8x256xf32>
    %195 = arith.addf %194, %193 : vector<8x256xf32>
    %196 = arith.divf %194, %195 : vector<8x256xf32>
    %197 = vector.extract_strided_slice %196 {offsets = [0, 0], sizes = [8, 128], strides = [1, 1]} : vector<8x256xf32> to vector<8x128xf32>
    %198 = vector.extract_strided_slice %196 {offsets = [0, 128], sizes = [8, 128], strides = [1, 1]} : vector<8x256xf32> to vector<8x128xf32>
    %199 = vector.extract_strided_slice %187 {offsets = [0, 256], sizes = [8, 128], strides = [1, 1]} : vector<8x512xf32> to vector<8x128xf32>
    %200 = vector.extract_strided_slice %188 {offsets = [0, 256], sizes = [8, 128], strides = [1, 1]} : vector<8x384xf32> to vector<8x128xf32>
    %201 = vector.broadcast %8 : vector<1x128xf32> to vector<8x128xf32>
    %202 = arith.addf %200, %201 : vector<8x128xf32>
    %203 = arith.mulf %197, %202 : vector<8x128xf32>
    %204 = arith.addf %199, %203 : vector<8x128xf32>
    %205 = math.tanh %204 : vector<8x128xf32>
    %cst_52 = arith.constant 1.000000e+00 : f32
    %206 = vector.broadcast %cst_52 : f32 to vector<8x128xf32>
    %207 = arith.subf %206, %198 : vector<8x128xf32>
    %208 = arith.mulf %207, %205 : vector<8x128xf32>
    %209 = arith.mulf %198, %181 : vector<8x128xf32>
    %210 = arith.addf %208, %209 : vector<8x128xf32>
    %211 = arith.index_cast %185 : i32 to index
    %c0_53 = arith.constant 0 : index
    %212 = vector.load %arg8[%211, %c0_53] : memref<64x128xf32, #tpu.memory_space<vmem>>, vector<8x128xf32>
    tpu.vector_store %arg8[%211, %c0_53], %210 {strides = array<i32>} : memref<64x128xf32, #tpu.memory_space<vmem>>, vector<8x128xf32>,
    %c7_i32 = arith.constant 7 : i32
    %c8_i32_54 = arith.constant 8 : i32
    %213 = arith.muli %c7_i32, %c8_i32_54 : i32
    %214 = tpu.assume_multiple %213, 8 : i32
    %215 = arith.index_cast %214 : i32 to index
    %c0_55 = arith.constant 0 : index
    %216 = vector.load %arg10[%215, %c0_55] : memref<64x512xf32, #tpu.memory_space<vmem>>, vector<8x512xf32>
    %cst_56 = arith.constant dense<0.000000e+00> : vector<8x384xf32>
    %217 = tpu.matmul %210, %7, %cst_56 {dimension_numbers = #tpu.dot_dimension_numbers<[1], [0], [0], [1], [0, 0, 1, 1], [], []>} : vector<8x128xf32>, vector<128x384xf32>, vector<8x384xf32> -> vector<8x384xf32>
    %218 = vector.extract_strided_slice %216 {offsets = [0, 0], sizes = [8, 256], strides = [1, 1]} : vector<8x512xf32> to vector<8x256xf32>
    %219 = vector.extract_strided_slice %217 {offsets = [0, 0], sizes = [8, 256], strides = [1, 1]} : vector<8x384xf32> to vector<8x256xf32>
    %220 = arith.addf %218, %219 : vector<8x256xf32>
    %221 = arith.negf %220 : vector<8x256xf32>
    %222 = math.exp %221 : vector<8x256xf32>
    %cst_57 = arith.constant 1.000000e+00 : f32
    %223 = vector.broadcast %cst_57 : f32 to vector<8x256xf32>
    %224 = arith.addf %223, %222 : vector<8x256xf32>
    %225 = arith.divf %223, %224 : vector<8x256xf32>
    %226 = vector.extract_strided_slice %225 {offsets = [0, 0], sizes = [8, 128], strides = [1, 1]} : vector<8x256xf32> to vector<8x128xf32>
    %227 = vector.extract_strided_slice %225 {offsets = [0, 128], sizes = [8, 128], strides = [1, 1]} : vector<8x256xf32> to vector<8x128xf32>
    %228 = vector.extract_strided_slice %216 {offsets = [0, 256], sizes = [8, 128], strides = [1, 1]} : vector<8x512xf32> to vector<8x128xf32>
    %229 = vector.extract_strided_slice %217 {offsets = [0, 256], sizes = [8, 128], strides = [1, 1]} : vector<8x384xf32> to vector<8x128xf32>
    %230 = vector.broadcast %8 : vector<1x128xf32> to vector<8x128xf32>
    %231 = arith.addf %229, %230 : vector<8x128xf32>
    %232 = arith.mulf %226, %231 : vector<8x128xf32>
    %233 = arith.addf %228, %232 : vector<8x128xf32>
    %234 = math.tanh %233 : vector<8x128xf32>
    %cst_58 = arith.constant 1.000000e+00 : f32
    %235 = vector.broadcast %cst_58 : f32 to vector<8x128xf32>
    %236 = arith.subf %235, %227 : vector<8x128xf32>
    %237 = arith.mulf %236, %234 : vector<8x128xf32>
    %238 = arith.mulf %227, %210 : vector<8x128xf32>
    %239 = arith.addf %237, %238 : vector<8x128xf32>
    %240 = arith.index_cast %214 : i32 to index
    %c0_59 = arith.constant 0 : index
    %241 = vector.load %arg8[%240, %c0_59] : memref<64x128xf32, #tpu.memory_space<vmem>>, vector<8x128xf32>
    tpu.vector_store %arg8[%240, %c0_59], %239 {strides = array<i32>} : memref<64x128xf32, #tpu.memory_space<vmem>>, vector<8x128xf32>,
    %c8_i32_60 = arith.constant 8 : i32
    %c0_61 = arith.constant 0 : index
    %c0_62 = arith.constant 0 : index
    %242 = vector.load %arg9[%c0_61, %c0_62] : memref<8x128xf32, #tpu.memory_space<vmem>>, vector<8x128xf32>
    tpu.vector_store %arg9[%c0_61, %c0_62], %239 {strides = array<i32>} : memref<8x128xf32, #tpu.memory_space<vmem>>, vector<8x128xf32>,
    %c0_63 = arith.constant 0 : index
    %c0_64 = arith.constant 0 : index
    %243 = vector.load %arg8[%c0_63, %c0_64] : memref<64x128xf32, #tpu.memory_space<vmem>>, vector<64x128xf32>
    %cst_65 = arith.constant 0.000000e+00 : f32
    %244 = vector.broadcast %cst_65 : f32 to vector<64x128xf32>
    %245 = arith.cmpf oge, %243, %244 : vector<64x128xf32>
    %cst_66 = arith.constant 0.00999999977 : f32
    %246 = vector.broadcast %cst_66 : f32 to vector<64x128xf32>
    %247 = arith.mulf %246, %243 : vector<64x128xf32>
    %248 = arith.select %245, %243, %247 : vector<64x128xi1>, vector<64x128xf32>
    %c0_67 = arith.constant 0 : index
    %c384 = arith.constant 384 : index
    %249 = vector.load %arg10[%c0_67, %c384] : memref<64x512xf32, #tpu.memory_space<vmem>>, vector<64x128xf32>
    %250 = arith.addf %248, %249 : vector<64x128xf32>
    %cst_68 = arith.constant dense<0.000000e+00> : vector<64xf32>
    %251 = vector.multi_reduction <add>, %250, %cst_68 [1] : vector<64x128xf32> to vector<64xf32>
    %252 = vector.shape_cast %251 : vector<64xf32> to vector<64x1xf32>
    %cst_69 = arith.constant 3.125000e-02 : f32
    %253 = vector.broadcast %cst_69 : f32 to vector<64x1xf32>
    %254 = arith.mulf %252, %253 : vector<64x1xf32>
    %255 = arith.mulf %250, %250 : vector<64x128xf32>
    %cst_70 = arith.constant dense<0.000000e+00> : vector<64xf32>
    %256 = vector.multi_reduction <add>, %255, %cst_70 [1] : vector<64x128xf32> to vector<64xf32>
    %257 = vector.shape_cast %256 : vector<64xf32> to vector<64x1xf32>
    %cst_71 = arith.constant 3.125000e-02 : f32
    %258 = vector.broadcast %cst_71 : f32 to vector<64x1xf32>
    %259 = arith.mulf %257, %258 : vector<64x1xf32>
    %260 = arith.mulf %254, %254 : vector<64x1xf32>
    %261 = arith.subf %259, %260 : vector<64x1xf32>
    %262 = vector.broadcast %254 : vector<64x1xf32> to vector<64x128xf32>
    %263 = arith.subf %250, %262 : vector<64x128xf32>
    %cst_72 = arith.constant 9.99999974E-6 : f32
    %264 = vector.broadcast %cst_72 : f32 to vector<64x1xf32>
    %265 = arith.addf %261, %264 : vector<64x1xf32>
    %266 = math.rsqrt %265 : vector<64x1xf32>
    %267 = vector.broadcast %266 : vector<64x1xf32> to vector<64x128xf32>
    %268 = arith.mulf %263, %267 : vector<64x128xf32>
    %c0_73 = arith.constant 0 : index
    %c0_74 = arith.constant 0 : index
    %269 = vector.load %arg5[%c0_73, %c0_74] : memref<1x128xf32, #tpu.memory_space<vmem>>, vector<1x128xf32>
    %270 = vector.broadcast %269 : vector<1x128xf32> to vector<64x128xf32>
    %271 = arith.mulf %268, %270 : vector<64x128xf32>
    %c0_75 = arith.constant 0 : index
    %c0_76 = arith.constant 0 : index
    %272 = vector.load %arg6[%c0_75, %c0_76] : memref<1x128xf32, #tpu.memory_space<vmem>>, vector<1x128xf32>
    %273 = vector.broadcast %272 : vector<1x128xf32> to vector<64x128xf32>
    %274 = arith.addf %271, %273 : vector<64x128xf32>
    %c0_77 = arith.constant 0 : index
    %c0_78 = arith.constant 0 : index
    %275 = vector.load %arg8[%c0_77, %c0_78] : memref<64x128xf32, #tpu.memory_space<vmem>>, vector<64x128xf32>
    tpu.vector_store %arg8[%c0_77, %c0_78], %274 {strides = array<i32>} : memref<64x128xf32, #tpu.memory_space<vmem>>, vector<64x128xf32>,
    return
  }
}

module attributes {stable_mosaic.version = 11 : i64} {
  func.func @_fc_kernel(%arg0: i32, %arg1: i32, %arg2: memref<64x128xf32, #tpu.memory_space<vmem>>, %arg3: memref<128x128xf32, #tpu.memory_space<vmem>>, %arg4: memref<1x128xf32, #tpu.memory_space<vmem>>, %arg5: memref<64x128xf32, #tpu.memory_space<vmem>>) attributes {dimension_semantics = [#tpu.dimension_semantics<parallel>, #tpu.dimension_semantics<parallel>], iteration_bounds = array<i64: 1, 1>, scalar_prefetch = 0 : i64, scratch_operands = 0 : i64, tpu.core_type = #tpu.core_type<tc>, window_params = [{transform_indices = @transform_0, window_bounds = array<i64: 64, 128>}, {transform_indices = @transform_1, window_bounds = array<i64: 128, 128>}, {transform_indices = @transform_2, window_bounds = array<i64: 1, 128>}, {transform_indices = @transform_3, window_bounds = array<i64: 64, 128>}]} {
    %c0 = arith.constant 0 : index
    %c0_0 = arith.constant 0 : index
    %0 = vector.load %arg2[%c0, %c0_0] : memref<64x128xf32, #tpu.memory_space<vmem>>, vector<64x128xf32>
    %c0_1 = arith.constant 0 : index
    %c0_2 = arith.constant 0 : index
    %1 = vector.load %arg3[%c0_1, %c0_2] : memref<128x128xf32, #tpu.memory_space<vmem>>, vector<128x128xf32>
    %cst = arith.constant dense<0.000000e+00> : vector<64x128xf32>
    %2 = tpu.matmul %0, %1, %cst {dimension_numbers = #tpu.dot_dimension_numbers<[1], [0], [0], [1], [0, 0, 1, 1], [], []>} : vector<64x128xf32>, vector<128x128xf32>, vector<64x128xf32> -> vector<64x128xf32>
    %c0_3 = arith.constant 0 : index
    %c0_4 = arith.constant 0 : index
    %3 = vector.load %arg4[%c0_3, %c0_4] : memref<1x128xf32, #tpu.memory_space<vmem>>, vector<1x128xf32>
    %4 = vector.broadcast %3 : vector<1x128xf32> to vector<64x128xf32>
    %5 = arith.addf %2, %4 : vector<64x128xf32>
    %c0_5 = arith.constant 0 : index
    %c0_6 = arith.constant 0 : index
    %6 = vector.load %arg5[%c0_5, %c0_6] : memref<64x128xf32, #tpu.memory_space<vmem>>, vector<64x128xf32>
    tpu.vector_store %arg5[%c0_5, %c0_6], %5 {strides = array<i32>} : memref<64x128xf32, #tpu.memory_space<vmem>>, vector<64x128xf32>,
    return
  }
  func.func @transform_0(%arg0: i32, %arg1: i32) -> (i32, i32) {
    %c0_i32 = arith.constant 0 : i32
    %c0_i32_0 = arith.constant 0 : i32
    return %arg1, %c0_i32 : i32, i32
  }
  func.func @transform_1(%arg0: i32, %arg1: i32) -> (i32, i32) {
    %c0_i32 = arith.constant 0 : i32
    %c0_i32_0 = arith.constant 0 : i32
    return %c0_i32, %arg0 : i32, i32
  }
  func.func @transform_2(%arg0: i32, %arg1: i32) -> (i32, i32) {
    %c0_i32 = arith.constant 0 : i32
    %c0_i32_0 = arith.constant 0 : i32
    return %c0_i32, %arg0 : i32, i32
  }
  func.func @transform_3(%arg0: i32, %arg1: i32) -> (i32, i32) {
    %c0_i32 = arith.constant 0 : i32
    return %arg1, %arg0 : i32, i32
  }
}

</mosaic_0001>

<bundles_post_ra>
// kernel: first_model_forward.3
= control target key start
LH: loop header
LB: loop body
LE: loop exit
PB: predicated region body
PF: predicated region fallthrough
CT: control target
= control target key end

     0   :  { %7 = vsyncpa [#allocation3], 0  ;;  %s103_s0 = inlined_call_operand.vmem [shape: s32[64], index: 0, kind: input, shape index: {}]   ;;  %s104_s1 = inlined_call_operand.vmem [shape: f32[64,128], index: 1, kind: input, shape index: {}]   ;;  %s105_s2 = inlined_call_operand.vmem [shape: f32[64,128], index: 2, kind: output, shape index: {}]  }
   0x1   :  { %s14_s11 = sshll.u32 %s103_s0, 4  ;;  %s15_s11 = int_to_ptr.vmem [resolvable:$true] %s14_s11 }
   0x2   :  { %s56_s12 = scalar_lea.vmem %s15_s11, 16  ;;  %p61_p1 = scmp.lt.s32.totalorder %s15_s11, %s15_s11 }
   0x3   :  { %p57_p0 = scmp.ne.s32.totalorder %s15_s11, %s56_s12  ;;  %p62_p2 = scmp.lt.s32.totalorder %s56_s12, %s56_s12 }
   0x5   :  { %p63_p3 = por %p62_p2, %p61_p1 }
   0x7   :  { %p64_p4 = pnand %p63_p3, %p57_p0 }
   0x9   :  { %67 = shalt.err (!%p64_p4)
}
   0xa   :  { %s78_s13 = smov [#allocation2]  }
   0xb   :  { %17 = dma.vmem_to_smem %s15_s11, 16, %s78_s13, [#allocation3]  }
   0xc   :  { %72 = dma.done.wait [#allocation3], 16  }
   0xd   :  { %73 = vsyncadd [#allocation3], 4294967280 }
   0xe   :  { %23 = sfence }
   0xf   :  { %s74_s14 = smov 0  }
  0x10 LB: > { %s30_s15 = sld [smem:[#allocation2 + %s76_s14]]  ;;  %s33_s17 = scalar_lea.vmem %s105_s2, %s76_s14  ;;  %s76_s14 = sphi %s74_s14, %s29_s14  }
  0x11   : > { %s29_s14 = sadd.s32 1, %s76_s14  }
  0x12   : > { %p26_p5 = scmp.ge.s32.totalorder %s29_s14, 64  }
  0x14   :  { %28 = sbr.rel (!%p26_p5) target bundleno = 16 (0x10), region = 41 }
  0x16   : > { %s31_s20 = scalar_lea.vmem %s104_s1, %s30_s15 }
  0x17   : > { %v32_v0 = vld [vmem:[%s31_s20] sm:$0x1] }
  0x18   : > { %34 = vst [vmem:[%s33_s17] sm:$0x1] %v32_v0 }
  0x19   :  { %39 = vsyncpa [#allocation3], 1 }

// kernel: first_model_forward.5
= control target key start
LH: loop header
LB: loop body
LE: loop exit
PB: predicated region body
PF: predicated region fallthrough
CT: control target
= control target key end

     0   :  { %s382_s1 = inlined_call_operand.vmem [shape: f32[128,128], index: 1, kind: input, shape index: {}]   ;;  %s383_s0 = inlined_call_operand.vmem [shape: f32[64,128], index: 0, kind: input, shape index: {}]   ;;  %s384_s2 = inlined_call_operand.vmem [shape: f32[1,128], index: 2, kind: input, shape index: {}]   ;;  %s385_s3 = inlined_call_operand.vmem [shape: f32[64,128], index: 3, kind: output, shape index: {}]  }
   0x1   :  { %v37_v0 = vld [vmem:[%s382_s1 + $0x78] sm:$0xff]  ;;  %v36_v1 = vld [vmem:[%s382_s1 + $0x70] sm:$0xff]  ;;  %v35_v2 = vld [vmem:[%s382_s1 + $0x68] sm:$0xff] }
   0x2   :  { %187 = vmatprep.subr.mxu0 %v37_v0  ;;  %231 = vmatprep.subr.mxu1 %v37_v0  ;;  %v34_v3 = vld [vmem:[%s382_s1 + $0x60] sm:$0xff]  ;;  %v33_v4 = vld [vmem:[%s382_s1 + $0x58] sm:$0xff]  ;;  %v32_v5 = vld [vmem:[%s382_s1 + $0x50] sm:$0xff] }
   0x3   :  { %188 = vmatpush3.msra.mxu0 %v37_v0  ;;  %247 = vmatpush3.msra.mxu1 %v37_v0  ;;  %v31_v6 = vld [vmem:[%s382_s1 + $0x48] sm:$0xff]  ;;  %v30_v7 = vld [vmem:[%s382_s1 + $0x40] sm:$0xff]  ;;  %v29_v8 = vld [vmem:[%s382_s1 + $0x38] sm:$0xff] }
   0x4   :  { %189 = vmatprep.subr.mxu0 %v36_v1  ;;  %232 = vmatprep.subr.mxu1 %v36_v1  ;;  %v28_v9 = vld [vmem:[%s382_s1 + $0x30] sm:$0xff]  ;;  %v27_v10 = vld [vmem:[%s382_s1 + $0x28] sm:$0xff]  ;;  %v26_v11 = vld [vmem:[%s382_s1 + $0x20] sm:$0xff] }
   0x5   :  { %190 = vmatpush3.msra.mxu0 %v36_v1  ;;  %248 = vmatpush3.msra.mxu1 %v36_v1  ;;  %v25_v12 = vld [vmem:[%s382_s1 + $0x18] sm:$0xff]  ;;  %v24_v13 = vld [vmem:[%s382_s1 + $0x10] sm:$0xff]  ;;  %v23_v14 = vld [vmem:[%s382_s1 + $0x8] sm:$0xff] }
   0x6   :  { %191 = vmatprep.subr.mxu0 %v35_v2  ;;  %233 = vmatprep.subr.mxu1 %v35_v2  ;;  %v22_v15 = vld [vmem:[%s382_s1] sm:$0xff]  ;;  %v15_v18 = vld [vmem:[%s383_s0 + $0x8] sm:$0xff]  ;;  %v16_v20 = vld [vmem:[%s383_s0 + $0x10] sm:$0xff] }
   0x7   :  { %192 = vmatpush3.msra.mxu0 %v35_v2  ;;  %249 = vmatpush3.msra.mxu1 %v35_v2  ;;  %v14_v16 = vld [vmem:[%s383_s0] sm:$0xff]  ;;  %v19_v19 = vld [vmem:[%s383_s0 + $0x28] sm:$0xff]  ;;  %v20_v21 = vld [vmem:[%s383_s0 + $0x30] sm:$0xff] }
   0x8   :  { %193 = vmatprep.subr.mxu0 %v34_v3  ;;  %234 = vmatprep.subr.mxu1 %v34_v3  ;;  %v18_v17 = vld [vmem:[%s383_s0 + $0x20] sm:$0xff]  ;;  %v17_v22 = vld [vmem:[%s383_s0 + $0x18] sm:$0xff] }
   0x9   :  { %194 = vmatpush3.msra.mxu0 %v34_v3  ;;  %250 = vmatpush3.msra.mxu1 %v34_v3  ;;  %v21_v23 = vld [vmem:[%s383_s0 + $0x38] sm:$0xff]  ;;  %v162_v24 = vld [vmem:[%s384_s2] ss:$0 sm:$0xff] }
   0xa   :  { %195 = vmatprep.subr.mxu0 %v33_v4  ;;  %235 = vmatprep.subr.mxu1 %v33_v4 }
   0xb   :  { %196 = vmatpush3.msra.mxu0 %v33_v4  ;;  %251 = vmatpush3.msra.mxu1 %v33_v4 }
   0xc   :  { %197 = vmatprep.subr.mxu0 %v32_v5  ;;  %236 = vmatprep.subr.mxu1 %v32_v5 }
   0xd   :  { %198 = vmatpush3.msra.mxu0 %v32_v5  ;;  %252 = vmatpush3.msra.mxu1 %v32_v5 }
   0xe   :  { %199 = vmatprep.subr.mxu0 %v31_v6  ;;  %237 = vmatprep.subr.mxu1 %v31_v6 }
   0xf   :  { %200 = vmatpush3.msra.mxu0 %v31_v6  ;;  %253 = vmatpush3.msra.mxu1 %v31_v6 }
  0x10   :  { %201 = vmatprep.subr.mxu0 %v30_v7  ;;  %238 = vmatprep.subr.mxu1 %v30_v7 }
  0x11   :  { %202 = vmatpush3.msra.mxu0 %v30_v7  ;;  %254 = vmatpush3.msra.mxu1 %v30_v7 }
  0x12   :  { %203 = vmatprep.subr.mxu0 %v29_v8  ;;  %239 = vmatprep.subr.mxu1 %v29_v8 }
  0x13   :  { %204 = vmatpush3.msra.mxu0 %v29_v8  ;;  %255 = vmatpush3.msra.mxu1 %v29_v8 }
  0x14   :  { %205 = vmatprep.subr.mxu0 %v28_v9  ;;  %240 = vmatprep.subr.mxu1 %v28_v9 }
  0x15   :  { %206 = vmatpush3.msra.mxu0 %v28_v9  ;;  %256 = vmatpush3.msra.mxu1 %v28_v9 }
  0x16   :  { %207 = vmatprep.subr.mxu0 %v27_v10  ;;  %241 = vmatprep.subr.mxu1 %v27_v10 }
  0x17   :  { %208 = vmatpush3.msra.mxu0 %v27_v10  ;;  %257 = vmatpush3.msra.mxu1 %v27_v10 }
  0x18   :  { %209 = vmatprep.subr.mxu0 %v26_v11  ;;  %242 = vmatprep.subr.mxu1 %v26_v11 }
  0x19   :  { %210 = vmatpush3.msra.mxu0 %v26_v11  ;;  %258 = vmatpush3.msra.mxu1 %v26_v11 }
  0x1a   :  { %211 = vmatprep.subr.mxu0 %v25_v12  ;;  %243 = vmatprep.subr.mxu1 %v25_v12 }
  0x1b   :  { %212 = vmatpush3.msra.mxu0 %v25_v12  ;;  %259 = vmatpush3.msra.mxu1 %v25_v12 }
  0x1c   :  { %213 = vmatprep.subr.mxu0 %v24_v13  ;;  %244 = vmatprep.subr.mxu1 %v24_v13 }
  0x1d   :  { %214 = vmatpush3.msra.mxu0 %v24_v13  ;;  %260 = vmatpush3.msra.mxu1 %v24_v13 }
  0x1e   :  { %215 = vmatprep.subr.mxu0 %v23_v14  ;;  %245 = vmatprep.subr.mxu1 %v23_v14 }
  0x1f   :  { %216 = vmatpush3.msra.mxu0 %v23_v14  ;;  %261 = vmatpush3.msra.mxu1 %v23_v14 }
  0x20   :  { %217 = vmatprep.subr.mxu0 %v22_v15  ;;  %246 = vmatprep.subr.mxu1 %v22_v15 }
  0x21   :  { %218 = vmatpush3.msra.mxu0 %v22_v15  ;;  %262 = vmatpush3.msra.mxu1 %v22_v15 }
  0x22   :  { %219 = vmatprep.mubr.f32.mxu0 %v14_v16  ;;  %225 = vmatprep.mubr.f32.mxu1 %v18_v17 }
  0x23   :  { %220 = vmatmul.mubr.f32.vlgmr.msra.gmra.mxu0 %v15_v18  ;;  %226 = vmatmul.mubr.f32.vlgmr.msra.gmra.mxu1 %v19_v19 }
  0x24   :  { %222 = vmatprep.mubr.f32.mxu0 %v16_v20  ;;  %228 = vmatprep.mubr.f32.mxu1 %v20_v21 }
  0x27   :  { %223 = vmatmul.mubr.f32.gmra.mxu0 %v17_v22  ;;  %229 = vmatmul.mubr.f32.gmra.mxu1 %v21_v23 }
  0xe3   :  { %v221_v25 = vpop.f32.mrf.mxu0  ;;  %v227_v26 = vpop.f32.mrf.mxu1 }
  0xe4   :  { %v117_v27 = vadd.f32 %v221_v25, %v162_v24  ;;  %v137_v28 = vadd.f32 %v227_v26, %v162_v24 }
  0xe5   :  { %v111_v29 = vpop.f32.mrf.mxu0  ;;  %v131_v30 = vpop.f32.mrf.mxu1 }
  0xe6   :  { %151 = vst [vmem:[%s385_s3 + $0x8] sm:$0xff] %v117_v27  ;;  %155 = vst [vmem:[%s385_s3 + $0x28] sm:$0xff] %v137_v28  ;;  %v112_v31 = vadd.f32 %v162_v24, %v111_v29  ;;  %v132_v32 = vadd.f32 %v162_v24, %v131_v30 }
  0xe7   :  { %v224_v33 = vpop.f32.mrf.mxu0  ;;  %v230_v34 = vpop.f32.mrf.mxu1 }
  0xe8   :  { %150 = vst [vmem:[%s385_s3] sm:$0xff] %v112_v31  ;;  %154 = vst [vmem:[%s385_s3 + $0x20] sm:$0xff] %v132_v32  ;;  %v127_v35 = vadd.f32 %v224_v33, %v162_v24  ;;  %v147_v36 = vadd.f32 %v230_v34, %v162_v24 }
  0xe9   :  { %v121_v37 = vpop.f32.mrf.mxu0  ;;  %v141_v38 = vpop.f32.mrf.mxu1 }
  0xea   :  { %153 = vst [vmem:[%s385_s3 + $0x18] sm:$0xff] %v127_v35  ;;  %157 = vst [vmem:[%s385_s3 + $0x38] sm:$0xff] %v147_v36  ;;  %v122_v39 = vadd.f32 %v162_v24, %v121_v37  ;;  %v142_v40 = vadd.f32 %v162_v24, %v141_v38 }
  0xec   :  { %152 = vst [vmem:[%s385_s3 + $0x10] sm:$0xff] %v122_v39  ;;  %156 = vst [vmem:[%s385_s3 + $0x30] sm:$0xff] %v142_v40 }

// kernel: first_model_forward.4
= control target key start
LH: loop header
LB: loop body
LE: loop exit
PB: predicated region body
PF: predicated region fallthrough
CT: control target
= control target key end

     0   :  { %v4208_v3 = vmov 0.0   ;;  %vm2604_vm0 = vmmov 0   ;;  %s4198_s1 = inlined_call_operand.vmem [shape: f32[128,512], index: 1, kind: input, shape index: {}]   ;;  %s4199_s0 = inlined_call_operand.vmem [shape: f32[64,128], index: 0, kind: input, shape index: {}]   ;;  %s4200_s2 = inlined_call_operand.vmem [shape: f32[128,384], index: 2, kind: input, shape index: {}]   ;;  %s4201_s7 = inlined_call_operand.vmem [shape: f32[8,128], index: 7, kind: input, shape index: {}]   ;;  %s4202_s3 = inlined_call_operand.vmem [shape: f32[1,512], index: 3, kind: input, shape index: {}]   ;;  %s4203_s4 = inlined_call_operand.vmem [shape: f32[1,128], index: 4, kind: input, shape index: {}]   ;;  %s4204_s5 = inlined_call_operand.vmem [shape: f32[1,128], index: 5, kind: input, shape index: {}]   ;;  %s4205_s6 = inlined_call_operand.vmem [shape: f32[1,128], index: 6, kind: input, shape index: {}]   ;;  %s4206_s8 = inlined_call_operand.vmem [shape: f32[64,128], index: 8, kind: output, shape index: {0}]   ;;  %s4207_s9 = inlined_call_operand.vmem [shape: f32[8,128], index: 9, kind: output, shape index: {1}]  }
   0x1   :  { %v100_v0 = vld [vmem:[%s4198_s1 + $0x1e8] sm:$0xff]  ;;  %v99_v1 = vld [vmem:[%s4198_s1 + $0x1e0] sm:$0xff]  ;;  %189 = vmatprep.mubr.f32.mxu0 %v4208_v3  ;;  %302 = vmatprep.mubr.f32.mxu1 %v4208_v3  ;;  %v102_v14 = vld [vmem:[%s4198_s1 + $0x1f8] sm:$0xff] }
   0x2   :  { %v96_v2 = vld [vmem:[%s4198_s1 + $0x1c8] sm:$0xff]  ;;  %125 = vmatprep.subr.mxu0 %v100_v0  ;;  %v95_v4 = vld [vmem:[%s4198_s1 + $0x1c0] sm:$0xff]  ;;  %238 = vmatprep.subr.mxu1 %v102_v14  ;;  %v101_v16 = vld [vmem:[%s4198_s1 + $0x1f0] sm:$0xff] }
   0x3   :  { %126 = vmatpush1.msra.mxu0 %v99_v1  ;;  %v92_v5 = vld [vmem:[%s4198_s1 + $0x1a8] sm:$0xff]  ;;  %v91_v6 = vld [vmem:[%s4198_s1 + $0x1a0] sm:$0xff]  ;;  %239 = vmatpush1.msra.mxu1 %v101_v16  ;;  %v98_v18 = vld [vmem:[%s4198_s1 + $0x1d8] sm:$0xff] }
   0x4   :  { %127 = vmatprep.subr.mxu0 %v96_v2  ;;  %v88_v7 = vld [vmem:[%s4198_s1 + $0x188] sm:$0xff]  ;;  %v87_v8 = vld [vmem:[%s4198_s1 + $0x180] sm:$0xff]  ;;  %v97_v19 = vld [vmem:[%s4198_s1 + $0x1d0] sm:$0xff]  ;;  %240 = vmatprep.subr.mxu1 %v98_v18 }
   0x5   :  { %128 = vmatpush1.msra.mxu0 %v95_v4  ;;  %v84_v9 = vld [vmem:[%s4198_s1 + $0x168] sm:$0xff]  ;;  %v83_v10 = vld [vmem:[%s4198_s1 + $0x160] sm:$0xff]  ;;  %v94_v21 = vld [vmem:[%s4198_s1 + $0x1b8] sm:$0xff]  ;;  %241 = vmatpush1.msra.mxu1 %v97_v19 }
   0x6   :  { %129 = vmatprep.subr.mxu0 %v92_v5  ;;  %v80_v11 = vld [vmem:[%s4198_s1 + $0x148] sm:$0xff]  ;;  %v79_v12 = vld [vmem:[%s4198_s1 + $0x140] sm:$0xff]  ;;  %v93_v23 = vld [vmem:[%s4198_s1 + $0x1b0] sm:$0xff]  ;;  %242 = vmatprep.subr.mxu1 %v94_v21 }
   0x7   :  { %130 = vmatpush1.msra.mxu0 %v91_v6  ;;  %v76_v13 = vld [vmem:[%s4198_s1 + $0x128] sm:$0xff]  ;;  %v75_v15 = vld [vmem:[%s4198_s1 + $0x120] sm:$0xff]  ;;  %v90_v25 = vld [vmem:[%s4198_s1 + $0x198] sm:$0xff]  ;;  %243 = vmatpush1.msra.mxu1 %v93_v23 }
   0x8   :  { %131 = vmatprep.subr.mxu0 %v88_v7  ;;  %v72_v17 = vld [vmem:[%s4198_s1 + $0x108] sm:$0xff]  ;;  %v71_v20 = vld [vmem:[%s4198_s1 + $0x100] sm:$0xff]  ;;  %v89_v26 = vld [vmem:[%s4198_s1 + $0x190] sm:$0xff]  ;;  %244 = vmatprep.subr.mxu1 %v90_v25 }
   0x9   :  { %132 = vmatpush1.msra.mxu0 %v87_v8  ;;  %v68_v22 = vld [vmem:[%s4198_s1 + $0xe8] sm:$0xff]  ;;  %v67_v24 = vld [vmem:[%s4198_s1 + $0xe0] sm:$0xff]  ;;  %v86_v28 = vld [vmem:[%s4198_s1 + $0x178] sm:$0xff]  ;;  %245 = vmatpush1.msra.mxu1 %v89_v26 }
   0xa   :  { %133 = vmatprep.subr.mxu0 %v84_v9  ;;  %v64_v27 = vld [vmem:[%s4198_s1 + $0xc8] sm:$0xff]  ;;  %v63_v29 = vld [vmem:[%s4198_s1 + $0xc0] sm:$0xff]  ;;  %v85_v30 = vld [vmem:[%s4198_s1 + $0x170] sm:$0xff]  ;;  %246 = vmatprep.subr.mxu1 %v86_v28 }
   0xb   :  { %134 = vmatpush1.msra.mxu0 %v83_v10  ;;  %v60_v31 = vld [vmem:[%s4198_s1 + $0xa8] sm:$0xff]  ;;  %v82_v32 = vld [vmem:[%s4198_s1 + $0x158] sm:$0xff]  ;;  %v59_v33 = vld [vmem:[%s4198_s1 + $0xa0] sm:$0xff]  ;;  %247 = vmatpush1.msra.mxu1 %v85_v30 }
   0xc   :  { %135 = vmatprep.subr.mxu0 %v80_v11  ;;  %v81_v34 = vld [vmem:[%s4198_s1 + $0x150] sm:$0xff]  ;;  %v56_v35 = vld [vmem:[%s4198_s1 + $0x88] sm:$0xff]  ;;  %v78_v36 = vld [vmem:[%s4198_s1 + $0x138] sm:$0xff]  ;;  %248 = vmatprep.subr.mxu1 %v82_v32 }
   0xd   :  { %136 = vmatpush1.msra.mxu0 %v79_v12  ;;  %v55_v37 = vld [vmem:[%s4198_s1 + $0x80] sm:$0xff]  ;;  %v77_v38 = vld [vmem:[%s4198_s1 + $0x130] sm:$0xff]  ;;  %v52_v39 = vld [vmem:[%s4198_s1 + $0x68] sm:$0xff]  ;;  %249 = vmatpush1.msra.mxu1 %v81_v34 }
   0xe   :  { %137 = vmatprep.subr.mxu0 %v76_v13  ;;  %v74_v40 = vld [vmem:[%s4198_s1 + $0x118] sm:$0xff]  ;;  %v51_v41 = vld [vmem:[%s4198_s1 + $0x60] sm:$0xff]  ;;  %250 = vmatprep.subr.mxu1 %v78_v36  ;;  %v73_v42 = vld [vmem:[%s4198_s1 + $0x110] sm:$0xff] }
   0xf   :  { %138 = vmatpush1.msra.mxu0 %v75_v15  ;;  %v48_v43 = vld [vmem:[%s4198_s1 + $0x48] sm:$0xff]  ;;  %251 = vmatpush1.msra.mxu1 %v77_v38  ;;  %v70_v44 = vld [vmem:[%s4198_s1 + $0xf8] sm:$0xff]  ;;  %v47_v45 = vld [vmem:[%s4198_s1 + $0x40] sm:$0xff] }
  0x10   :  { %139 = vmatprep.subr.mxu0 %v72_v17  ;;  %252 = vmatprep.subr.mxu1 %v74_v40  ;;  %v69_v46 = vld [vmem:[%s4198_s1 + $0xf0] sm:$0xff]  ;;  %v44_v47 = vld [vmem:[%s4198_s1 + $0x28] sm:$0xff]  ;;  %v66_v48 = vld [vmem:[%s4198_s1 + $0xd8] sm:$0xff] }
  0x11   :  { %140 = vmatpush1.msra.mxu0 %v71_v20  ;;  %253 = vmatpush1.msra.mxu1 %v73_v42  ;;  %v43_v49 = vld [vmem:[%s4198_s1 + $0x20] sm:$0xff]  ;;  %v65_v50 = vld [vmem:[%s4198_s1 + $0xd0] sm:$0xff]  ;;  %v40_v51 = vld [vmem:[%s4198_s1 + $0x8] sm:$0xff] }
  0x12   :  { %141 = vmatprep.subr.mxu0 %v68_v22  ;;  %254 = vmatprep.subr.mxu1 %v70_v44  ;;  %v62_v52 = vld [vmem:[%s4198_s1 + $0xb8] sm:$0xff]  ;;  %v39_v53 = vld [vmem:[%s4198_s1] sm:$0xff]  ;;  %v61_v54 = vld [vmem:[%s4198_s1 + $0xb0] sm:$0xff] }
  0x13   :  { %142 = vmatpush1.msra.mxu0 %v67_v24  ;;  %255 = vmatpush1.msra.mxu1 %v69_v46  ;;  %v2822_v55 = vld [vmem:[%s4199_s0] sm:$0xff]  ;;  %v2827_v56 = vld [vmem:[%s4200_s2 + $0x170] sm:$0xff]  ;;  %v2832_v57 = vld [vmem:[%s4200_s2 + $0x168] sm:$0xff] }
  0x14   :  { %143 = vmatprep.subr.mxu0 %v64_v27  ;;  %256 = vmatprep.subr.mxu1 %v66_v48  ;;  %4246 = vst [vmem:[#allocation3_spill] sm:$0xff] %v2827_v56  ;;  %v2837_v58 = vld [vmem:[%s4200_s2 + $0x158] sm:$0xff]  ;;  %v2847_v60 = vld [vmem:[%s4200_s2 + $0x150] sm:$0xff]  ;;  %v2857_v62 = vld [vmem:[%s4199_s0 + $0x8] sm:$0xff] }
  0x15   :  { %144 = vmatpush1.msra.mxu0 %v63_v29  ;;  %257 = vmatpush1.msra.mxu1 %v65_v50  ;;  %v58_v59 = vld [vmem:[%s4198_s1 + $0x98] sm:$0xff]  ;;  %v57_v61 = vld [vmem:[%s4198_s1 + $0x90] sm:$0xff]  ;;  %v2862_v63 = vld [vmem:[%s4200_s2 + $0x140] sm:$0xff] }
  0x16   :  { %145 = vmatprep.subr.mxu0 %v60_v31  ;;  %258 = vmatprep.subr.mxu1 %v62_v52  ;;  %v2868_v0 = vld [vmem:[%s4200_s2 + $0x138] sm:$0xff]  ;;  %v2874_v1 = vld [vmem:[%s4200_s2 + $0x128] sm:$0xff]  ;;  %v2884_v4 = vld [vmem:[%s4200_s2 + $0x120] sm:$0xff] }
  0x17   :  { %146 = vmatpush1.msra.mxu0 %v59_v33  ;;  %259 = vmatpush1.msra.mxu1 %v61_v54  ;;  %v54_v2 = vld [vmem:[%s4198_s1 + $0x78] sm:$0xff]  ;;  %v53_v5 = vld [vmem:[%s4198_s1 + $0x70] sm:$0xff]  ;;  %v2905_v8 = vld [vmem:[%s4200_s2 + $0x108] sm:$0xff] }
  0x18   :  { %147 = vmatprep.subr.mxu0 %v56_v35  ;;  %260 = vmatprep.subr.mxu1 %v58_v59  ;;  %v2894_v6 = vld [vmem:[%s4199_s0 + $0x10] sm:$0xff]  ;;  %v2911_v9 = vld [vmem:[%s4200_s2 + $0xf8] sm:$0xff]  ;;  %v2936_v14 = vld [vmem:[%s4200_s2 + $0xe0] sm:$0xff] }
  0x19   :  { %148 = vmatpush1.msra.mxu0 %v55_v37  ;;  %261 = vmatpush1.msra.mxu1 %v57_v61  ;;  %v2899_v7 = vld [vmem:[%s4200_s2 + $0x110] sm:$0xff]  ;;  %v50_v10 = vld [vmem:[%s4198_s1 + $0x58] sm:$0xff]  ;;  %v2948_v16 = vld [vmem:[%s4200_s2 + $0xc8] sm:$0xff] }
  0x1a   :  { %149 = vmatprep.subr.mxu0 %v52_v39  ;;  %262 = vmatprep.subr.mxu1 %v54_v2  ;;  %v2921_v11 = vld [vmem:[%s4200_s2 + $0xf0] sm:$0xff]  ;;  %v2931_v13 = vld [vmem:[%s4199_s0 + $0x18] sm:$0xff]  ;;  %v2958_v18 = vld [vmem:[%s4200_s2 + $0xc0] sm:$0xff]  ;;  %v105_v2 = vlaneseq }
  0x1b   :  { %150 = vmatpush1.msra.mxu0 %v51_v41  ;;  %263 = vmatpush1.msra.mxu1 %v53_v5  ;;  %v49_v12 = vld [vmem:[%s4198_s1 + $0x50] sm:$0xff]  ;;  %v2942_v15 = vld [vmem:[%s4200_s2 + $0xd8] sm:$0xff]  ;;  %v2968_v20 = vld [vmem:[%s4199_s0 + $0x20] sm:$0xff] }
  0x1c   :  { %151 = vmatprep.subr.mxu0 %v48_v43  ;;  %264 = vmatprep.subr.mxu1 %v50_v10  ;;  %v46_v17 = vld [vmem:[%s4198_s1 + $0x38] sm:$0xff]  ;;  %v45_v19 = vld [vmem:[%s4198_s1 + $0x30] sm:$0xff]  ;;  %v2979_v22 = vld [vmem:[%s4200_s2 + $0xa8] sm:$0xff]  ;;  %v106_v5 = vshrl.u32 %v105_v2, 7 }
  0x1d   :  { %152 = vmatpush1.msra.mxu0 %v47_v45  ;;  %265 = vmatpush1.msra.mxu1 %v49_v12  ;;  %v2973_v21 = vld [vmem:[%s4200_s2 + $0xb0] sm:$0xff]  ;;  %v2985_v23 = vld [vmem:[%s4200_s2 + $0x98] sm:$0xff]  ;;  %v3005_v27 = vld [vmem:[%s4199_s0 + $0x28] sm:$0xff] }
  0x1e   :  { %153 = vmatprep.subr.mxu0 %v44_v47  ;;  %266 = vmatprep.subr.mxu1 %v46_v17  ;;  %v42_v24 = vld [vmem:[%s4198_s1 + $0x18] sm:$0xff]  ;;  %v2995_v25 = vld [vmem:[%s4200_s2 + $0x90] sm:$0xff]  ;;  %v3010_v28 = vld [vmem:[%s4200_s2 + $0x80] sm:$0xff] }
  0x1f   :  { %154 = vmatpush1.msra.mxu0 %v43_v49  ;;  %267 = vmatpush1.msra.mxu1 %v45_v19  ;;  %v41_v26 = vld [vmem:[%s4198_s1 + $0x10] sm:$0xff]  ;;  %v3016_v29 = vld [vmem:[%s4200_s2 + $0x78] sm:$0xff]  ;;  %v3022_v30 = vld [vmem:[%s4200_s2 + $0x68] sm:$0xff] }
  0x20   :  { %155 = vmatprep.subr.mxu0 %v40_v51  ;;  %268 = vmatprep.subr.mxu1 %v42_v24  ;;  %v3029_v31 = vld [vmem:[%s4200_s2 + $0x60] sm:$0xff]  ;;  %v3036_v32 = vld [vmem:[%s4199_s0 + $0x30] sm:$0xff]  ;;  %v3047_v34 = vld [vmem:[%s4200_s2 + $0x48] sm:$0xff] }
  0x21   :  { %156 = vmatpush1.msra.mxu0 %v39_v53  ;;  %269 = vmatpush1.msra.mxu1 %v41_v26  ;;  %v3041_v33 = vld [vmem:[%s4200_s2 + $0x50] sm:$0xff]  ;;  %v3054_v35 = vld [vmem:[%s4200_s2 + $0x38] sm:$0xff]  ;;  %v3079_v39 = vld [vmem:[%s4200_s2 + $0x20] sm:$0xff] }
  0x22   :  { %190 = vmatmul.mubr.f32.vlgmr.msra.gmra.mxu0 %v2822_v55  ;;  %439 = vmatprep.subr.mxu0 %v2827_v56  ;;  %4247 = vst [vmem:[#allocation4_spill] sm:$0xff] %v3054_v35  ;;  %v3060_v36 = vld [vmem:[%s4200_s2 + $0x178] sm:$0xff]  ;;  %v3067_v37 = vld [vmem:[%s4200_s2 + $0x30] sm:$0xff]  ;;  %4249 = vst [vmem:[#allocation6_spill] sm:$0xff] %v3079_v39 }
  0x23   :  { %440 = vmatpush1.msra.mxu0 %v2832_v57  ;;  %195 = vmatprep.mubr.f32.mxu0 %v4208_v3  ;;  %4248 = vst [vmem:[#allocation5_spill] sm:$0xff] %v3067_v37  ;;  %v3074_v38 = vld [vmem:[%s4199_s0 + $0x38] sm:$0xff]  ;;  %v3092_v41 = vld [vmem:[%s4200_s2 + $0x8] sm:$0xff]  ;;  %v3100_v42 = vld [vmem:[%s4200_s2] sm:$0xff] }
  0x24   :  { %441 = vmatprep.subr.mxu0 %v2837_v58  ;;  %303 = vmatmul.mubr.f32.vlgmr.msra.gmra.mxu1 %v2822_v55  ;;  %v3085_v40 = vld [vmem:[%s4200_s2 + $0x18] sm:$0xff]  ;;  %4251 = vst [vmem:[#allocation8_spill] sm:$0xff] %v3092_v41  ;;  %4252 = vst [vmem:[#allocation9_spill] sm:$0xff] %v3100_v42  ;;  %v3105_v43 = vld [vmem:[%s4200_s2 + $0x160] sm:$0xff] }
  0x25   :  { %442 = vmatpush1.msra.mxu0 %v2847_v60  ;;  %2174 = vmatprep.subr.mxu1 %v4208_v3  ;;  %4250 = vst [vmem:[#allocation7_spill] sm:$0xff] %v3085_v40  ;;  %v3112_v44 = vld [vmem:[%s4201_s7] sm:$0xff]  ;;  %v3121_v45 = vld [vmem:[%s4200_s2 + $0x148] sm:$0xff]  ;;  %v3130_v46 = vld [vmem:[%s4200_s2 + $0x130] sm:$0xff] }
  0x26   :  { %196 = vmatmul.mubr.f32.gmra.mxu0 %v2857_v62  ;;  %443 = vmatprep.subr.mxu0 %v2862_v63  ;;  %v3138_v47 = vld [vmem:[%s4200_s2 + $0x118] sm:$0xff]  ;;  %v3148_v48 = vld [vmem:[%s4200_s2 + $0x100] sm:$0xff]  ;;  %v3156_v49 = vld [vmem:[%s4200_s2 + $0xe8] sm:$0xff] }
  0x27   :  { %444 = vmatpush1.msra.mxu0 %v2868_v0  ;;  %201 = vmatprep.mubr.f32.mxu0 %v4208_v3  ;;  %v3166_v50 = vld [vmem:[%s4200_s2 + $0xd0] sm:$0xff]  ;;  %v3174_v51 = vld [vmem:[%s4200_s2 + $0xb8] sm:$0xff]  ;;  %v3184_v52 = vld [vmem:[%s4200_s2 + $0xa0] sm:$0xff] }
  0x28   :  { %445 = vmatprep.subr.mxu0 %v2874_v1  ;;  %2175 = vmatpush3.msra.mxu1 %v3060_v36  ;;  %v3192_v53 = vld [vmem:[%s4200_s2 + $0x88] sm:$0xff]  ;;  %v3202_v54 = vld [vmem:[%s4200_s2 + $0x70] sm:$0xff]  ;;  %v3210_v55 = vld [vmem:[%s4200_s2 + $0x58] sm:$0xff] }
  0x29   :  { %446 = vmatpush1.msra.mxu0 %v2884_v4  ;;  %2176 = vmatprep.subr.mxu1 %v4208_v3  ;;  %4253 = vst [vmem:[#allocation10_spill] sm:$0xff] %v3210_v55  ;;  %v3220_v59 = vld [vmem:[%s4200_s2 + $0x40] sm:$0xff]  ;;  %v3228_v61 = vld [vmem:[%s4200_s2 + $0x28] sm:$0xff] }
  0x2a   :  { %202 = vmatmul.mubr.f32.gmra.mxu0 %v2894_v6  ;;  %447 = vmatprep.subr.mxu0 %v2899_v7  ;;  %4254 = vst [vmem:[#allocation11_spill] sm:$0xff] %v3220_v59  ;;  %4255 = vst [vmem:[#allocation12_spill] sm:$0xff] %v3228_v61  ;;  %v103_v10 = vld [vmem:[%s4202_s3] sm:$0xf] }
  0x2b   :  { %448 = vmatpush1.msra.mxu0 %v2905_v8  ;;  %207 = vmatprep.mubr.f32.mxu0 %v4208_v3 }
  0x2c   :  { %449 = vmatprep.subr.mxu0 %v2911_v9  ;;  %308 = vmatprep.mubr.f32.mxu1 %v4208_v3 }
  0x2d   :  { %450 = vmatpush1.msra.mxu0 %v2921_v11  ;;  %2177 = vmatpush3.msra.mxu1 %v3105_v43 }
  0x2e   :  { %208 = vmatmul.mubr.f32.gmra.mxu0 %v2931_v13  ;;  %451 = vmatprep.subr.mxu0 %v2936_v14 }
  0x2f   :  { %452 = vmatpush1.msra.mxu0 %v2942_v15  ;;  %213 = vmatprep.mubr.f32.mxu0 %v4208_v3 }
  0x30   :  { %453 = vmatprep.subr.mxu0 %v2948_v16  ;;  %309 = vmatmul.mubr.f32.gmra.mxu1 %v2857_v62  ;;  %v3238_v62 = vld [vmem:[%s4200_s2 + $0x10] sm:$0xff] }
  0x31   :  { %454 = vmatpush1.msra.mxu0 %v2958_v18  ;;  %2178 = vmatprep.subr.mxu1 %v4208_v3  ;;  %4256 = vst [vmem:[#allocation13_spill] sm:$0xff] %v3238_v62 }
  0x32   :  { %214 = vmatmul.mubr.f32.gmra.mxu0 %v2968_v20  ;;  %455 = vmatprep.subr.mxu0 %v2973_v21 }
  0x33   :  { %456 = vmatpush1.msra.mxu0 %v2979_v22  ;;  %219 = vmatprep.mubr.f32.mxu0 %v4208_v3 }
  0x34   :  { %457 = vmatprep.subr.mxu0 %v2985_v23  ;;  %314 = vmatprep.mubr.f32.mxu1 %v4208_v3 }
  0x35   :  { %458 = vmatpush1.msra.mxu0 %v2995_v25  ;;  %2179 = vmatpush3.msra.mxu1 %v3121_v45 }
  0x36   :  { %220 = vmatmul.mubr.f32.gmra.mxu0 %v3005_v27  ;;  %459 = vmatprep.subr.mxu0 %v3010_v28 }
  0x37   :  { %460 = vmatpush1.msra.mxu0 %v3016_v29  ;;  %225 = vmatprep.mubr.f32.mxu0 %v4208_v3 }
  0x38   :  { %461 = vmatprep.subr.mxu0 %v3022_v30  ;;  %2180 = vmatprep.subr.mxu1 %v4208_v3 }
  0x39   :  { %462 = vmatpush1.msra.mxu0 %v3029_v31  ;;  %2181 = vmatpush3.msra.mxu1 %v3130_v46 }
  0x3a   :  { %226 = vmatmul.mubr.f32.gmra.mxu0 %v3036_v32  ;;  %463 = vmatprep.subr.mxu0 %v3041_v33 }
  0x3b   :  { %464 = vmatpush1.msra.mxu0 %v3047_v34  ;;  %231 = vmatprep.mubr.f32.mxu0 %v4208_v3 }
  0x3c   :  { %465 = vmatprep.subr.mxu0 %v3054_v35  ;;  %315 = vmatmul.mubr.f32.gmra.mxu1 %v2894_v6  ;;  %v107_v6 = vsub.s32 0, %v106_v5 }
  0x3d   :  { %466 = vmatpush1.msra.mxu0 %v3067_v37  ;;  %2182 = vmatprep.subr.mxu1 %v4208_v3 }
  0x3e   :  { %232 = vmatmul.mubr.f32.gmra.mxu0 %v3074_v38  ;;  %467 = vmatprep.subr.mxu0 %v3079_v39  ;;  %v108_v19 = vrot.slane %v103_v10, %v107_v6 }
  0x3f   :  { %468 = vmatpush1.msra.mxu0 %v3085_v40  ;;  %503 = vmatprep.mubr.f32.mxu0 %v4208_v3 }
  0x40   :  { %469 = vmatprep.subr.mxu0 %v3092_v41  ;;  %2183 = vmatpush3.msra.mxu1 %v3138_v47 }
  0x41   :  { %470 = vmatpush1.msra.mxu0 %v3100_v42  ;;  %320 = vmatprep.mubr.f32.mxu1 %v4208_v3 }
  0x42   :  { %504 = vmatmul.mubr.f32.vlgmr.msra.gmra.mxu0 %v3112_v44  ;;  %615 = vmatprep.subr.mxu0 %v2827_v56 }
  0x43   :  { %616 = vmatpush1.msra.mxu0 %v2832_v57  ;;  %2184 = vmatprep.subr.mxu1 %v4208_v3 }
  0x44   :  { %617 = vmatprep.subr.mxu0 %v2837_v58  ;;  %2185 = vmatpush3.msra.mxu1 %v3148_v48 }
  0x45   :  { %618 = vmatpush1.msra.mxu0 %v2847_v60  ;;  %321 = vmatmul.mubr.f32.gmra.mxu1 %v2931_v13  ;;  %v111_v13 = vsub.s32 1, %v106_v5 }
  0x46   :  { %619 = vmatprep.subr.mxu0 %v2862_v63  ;;  %2186 = vmatprep.subr.mxu1 %v4208_v3 }
  0x47   :  { %2187 = vmatpush3.msra.mxu1 %v3156_v49  ;;  %326 = vmatprep.mubr.f32.mxu1 %v4208_v3  ;;  %v112_v24 = vrot.slane %v103_v10, %v111_v13 }
  0x48   :  { %2188 = vmatprep.subr.mxu1 %v4208_v3  ;;  %620 = vmatpush1.msra.mxu0 %v2868_v0 }
  0x49   :  { %2189 = vmatpush3.msra.mxu1 %v3166_v50  ;;  %621 = vmatprep.subr.mxu0 %v2874_v1 }
  0x4a   :  { %327 = vmatmul.mubr.f32.gmra.mxu1 %v2968_v20  ;;  %2190 = vmatprep.subr.mxu1 %v4208_v3 }
  0x4b   :  { %2191 = vmatpush3.msra.mxu1 %v3174_v51  ;;  %332 = vmatprep.mubr.f32.mxu1 %v4208_v3 }
  0x4c   :  { %2192 = vmatprep.subr.mxu1 %v4208_v3  ;;  %622 = vmatpush1.msra.mxu0 %v2884_v4 }
  0x4d   :  { %2193 = vmatpush3.msra.mxu1 %v3184_v52  ;;  %623 = vmatprep.subr.mxu0 %v2899_v7 }
  0x4e   :  { %333 = vmatmul.mubr.f32.gmra.mxu1 %v3005_v27  ;;  %2194 = vmatprep.subr.mxu1 %v4208_v3 }
  0x4f   :  { %2195 = vmatpush3.msra.mxu1 %v3192_v53  ;;  %338 = vmatprep.mubr.f32.mxu1 %v4208_v3 }
  0x50   :  { %2196 = vmatprep.subr.mxu1 %v4208_v3  ;;  %624 = vmatpush1.msra.mxu0 %v2905_v8 }
  0x51   :  { %2197 = vmatpush3.msra.mxu1 %v3202_v54  ;;  %625 = vmatprep.subr.mxu0 %v2911_v9 }
  0x52   :  { %339 = vmatmul.mubr.f32.gmra.mxu1 %v3036_v32  ;;  %2198 = vmatprep.subr.mxu1 %v4208_v3 }
  0x53   :  { %2199 = vmatpush3.msra.mxu1 %v3210_v55  ;;  %344 = vmatprep.mubr.f32.mxu1 %v4208_v3 }
  0x54   :  { %2200 = vmatprep.subr.mxu1 %v4208_v3  ;;  %626 = vmatpush1.msra.mxu0 %v2921_v11 }
  0x55   :  { %2201 = vmatpush3.msra.mxu1 %v3220_v59  ;;  %627 = vmatprep.subr.mxu0 %v2936_v14 }
  0x56   :  { %345 = vmatmul.mubr.f32.gmra.mxu1 %v3074_v38  ;;  %2202 = vmatprep.subr.mxu1 %v4208_v3 }
  0x57   :  { %2203 = vmatpush3.msra.mxu1 %v3228_v61  ;;  %2206 = vmatprep.mubr.msk.f32.mxu1 %vm2604_vm0, %v4208_v3 }
  0x58   :  { %2204 = vmatprep.subr.mxu1 %v4208_v3  ;;  %628 = vmatpush1.msra.mxu0 %v2942_v15 }
  0x59   :  { %2205 = vmatpush3.msra.mxu1 %v3238_v62  ;;  %629 = vmatprep.subr.mxu0 %v2948_v16 }
  0x5a   :  { %2207 = vmatmul.mubr.f32.vlgmr.msra.gmra.mxu1 %v3112_v44  ;;  %2209 = vmatprep.subr.mxu1 %v4208_v3 }
  0x5b   :  { %2210 = vmatpush3.msra.mxu1 %v3060_v36  ;;  %630 = vmatpush1.msra.mxu0 %v2958_v18 }
  0x5c   :  { %2211 = vmatprep.subr.mxu1 %v4208_v3  ;;  %631 = vmatprep.subr.mxu0 %v2973_v21 }
  0x5d   :  { %2212 = vmatpush3.msra.mxu1 %v3105_v43  ;;  %632 = vmatpush1.msra.mxu0 %v2979_v22 }
  0x5e   :  { %2213 = vmatprep.subr.mxu1 %v4208_v3  ;;  %633 = vmatprep.subr.mxu0 %v2985_v23 }
  0x5f   :  { %2214 = vmatpush3.msra.mxu1 %v3121_v45  ;;  %634 = vmatpush1.msra.mxu0 %v2995_v25 }
  0x60   :  { %2215 = vmatprep.subr.mxu1 %v4208_v3  ;;  %635 = vmatprep.subr.mxu0 %v3010_v28 }
  0x61   :  { %2216 = vmatpush3.msra.mxu1 %v3130_v46  ;;  %636 = vmatpush1.msra.mxu0 %v3016_v29 }
  0x62   :  { %2217 = vmatprep.subr.mxu1 %v4208_v3  ;;  %637 = vmatprep.subr.mxu0 %v3022_v30 }
  0x63   :  { %2218 = vmatpush3.msra.mxu1 %v3138_v47  ;;  %638 = vmatpush1.msra.mxu0 %v3029_v31 }
  0x64   :  { %2219 = vmatprep.subr.mxu1 %v4208_v3  ;;  %639 = vmatprep.subr.mxu0 %v3041_v33 }
  0x65   :  { %2220 = vmatpush3.msra.mxu1 %v3148_v48  ;;  %640 = vmatpush1.msra.mxu0 %v3047_v34 }
  0x66   :  { %2221 = vmatprep.subr.mxu1 %v4208_v3  ;;  %641 = vmatprep.subr.mxu0 %v3054_v35 }
  0x67   :  { %2222 = vmatpush3.msra.mxu1 %v3156_v49  ;;  %642 = vmatpush1.msra.mxu0 %v3067_v37 }
  0x68   :  { %2223 = vmatprep.subr.mxu1 %v4208_v3  ;;  %643 = vmatprep.subr.mxu0 %v3079_v39 }
  0x69   :  { %2224 = vmatpush3.msra.mxu1 %v3166_v50  ;;  %644 = vmatpush1.msra.mxu0 %v3085_v40 }
  0x6a   :  { %2225 = vmatprep.subr.mxu1 %v4208_v3  ;;  %645 = vmatprep.subr.mxu0 %v3092_v41 }
  0x6b   :  { %2226 = vmatpush3.msra.mxu1 %v3174_v51  ;;  %646 = vmatpush1.msra.mxu0 %v3100_v42 }
  0x6c   :  { %2227 = vmatprep.subr.mxu1 %v4208_v3  ;;  %679 = vmatprep.mubr.f32.mxu0 %v4208_v3 }
  0x6d   :  { %2228 = vmatpush3.msra.mxu1 %v3184_v52  ;;  %2241 = vmatprep.mubr.msk.f32.mxu1 %vm2604_vm0, %v4208_v3 }
  0x6e   :  { %2229 = vmatprep.subr.mxu1 %v4208_v3  ;;  %786 = vmatprep.subr.mxu0 %v2827_v56 }
  0x6f   :  { %2230 = vmatpush3.msra.mxu1 %v3192_v53 }
  0x70   :  { %2231 = vmatprep.subr.mxu1 %v4208_v3 }
  0x71   :  { %2232 = vmatpush3.msra.mxu1 %v3202_v54 }
  0x72   :  { %2233 = vmatprep.subr.mxu1 %v4208_v3 }
  0x73   :  { %2234 = vmatpush3.msra.mxu1 %v3210_v55 }
  0x74   :  { %2235 = vmatprep.subr.mxu1 %v4208_v3 }
  0x75   :  { %2236 = vmatpush3.msra.mxu1 %v3220_v59 }
  0x76   :  { %2237 = vmatprep.subr.mxu1 %v4208_v3 }
  0x77   :  { %2238 = vmatpush3.msra.mxu1 %v3228_v61 }
  0x78   :  { %2239 = vmatprep.subr.mxu1 %v4208_v3 }
  0x79   :  { %2240 = vmatpush3.msra.mxu1 %v3238_v62 }
  0x7a   :  { %2244 = vmatprep.subr.mxu1 %v4208_v3 }
  0xe2   :  { %v191_v12 = vpop.f32.mrf.mxu0 }
  0xe4   :  { %v193_v17 = vpop.f32.mrf.mxu0 }
  0xe5   :  { %v194_v55 = vadd.f32 %v193_v17, %v112_v24 }
  0xe6   :  { %v197_v20 = vpop.f32.mrf.mxu0 }
  0xe7   :  { %v3305_v26 = vadd.f32 %v197_v20, %v108_v19 }
  0xe8   :  { %v199_v27 = vpop.f32.mrf.mxu0 }
  0xe9   :  { %4257 = vst [vmem:[#allocation14_spill] sm:$0xff] %v3305_v26  ;;  %v3307_v32 = vadd.f32 %v199_v27, %v112_v24 }
  0xea   :  { %v203_v38 = vpop.f32.mrf.mxu0 }
  0xeb   :  { %4258 = vst [vmem:[#allocation15_spill] sm:$0xff] %v3307_v32  ;;  %v3309_v3 = vadd.f32 %v203_v38, %v108_v19 }
  0xec   :  { %v205_v2 = vpop.f32.mrf.mxu0 }
  0xed   :  { %4259 = vst [vmem:[#allocation16_spill] sm:$0xff] %v3309_v3  ;;  %v3311_v56 = vadd.f32 %v205_v2, %v112_v24 }
  0xee   :  { %v209_v62 = vpop.f32.mrf.mxu0 }
  0xef   :  { %4260 = vst [vmem:[#allocation17_spill] sm:$0xff] %v3311_v56  ;;  %v3313_v42 = vadd.f32 %v209_v62, %v108_v19  ;;  %v304_v56 = vpop.f32.mrf.mxu1 }
  0xf0   :  { %v211_v41 = vpop.f32.mrf.mxu0 }
  0xf1   :  { %4261 = vst [vmem:[#allocation18_spill] sm:$0xff] %v3313_v42  ;;  %v3315_v61 = vadd.f32 %v211_v41, %v112_v24  ;;  %v115_v41 = vsub.s32 2, %v106_v5 }
  0xf2   :  { %v215_v6 = vpop.f32.mrf.mxu0 }
  0xf3   :  { %4262 = vst [vmem:[#allocation19_spill] sm:$0xff] %v3315_v61  ;;  %v3317_v40 = vadd.f32 %v215_v6, %v108_v19  ;;  %v3329_v6 = vpop.f32.mrf.mxu1 }
  0xf4   :  { %v217_v13 = vpop.f32.mrf.mxu0 }
  0xf5   :  { %4263 = vst [vmem:[#allocation20_spill] sm:$0xff] %v3317_v40  ;;  %v3319_v20 = vadd.f32 %v217_v13, %v112_v24  ;;  %v119_v13 = vsub.s32 3, %v106_v5  ;;  %v310_v39 = vpop.f32.mrf.mxu1 }
  0xf6   :  { %v221_v27 = vpop.f32.mrf.mxu0 }
  0xf7   :  { %4264 = vst [vmem:[#allocation21_spill] sm:$0xff] %v3319_v20  ;;  %v3321_v32 = vadd.f32 %v221_v27, %v108_v19  ;;  %v192_v27 = vadd.f32 %v191_v12, %v108_v19 }
  0xf8   :  { %v223_v38 = vpop.f32.mrf.mxu0 }
  0xf9   :  { %4265 = vst [vmem:[#allocation22_spill] sm:$0xff] %v3321_v32  ;;  %v3323_v3 = vadd.f32 %v223_v38, %v112_v24  ;;  %v116_v38 = vrot.slane %v103_v10, %v115_v41 }
  0xfa   :  { %v227_v2 = vpop.f32.mrf.mxu0 }
  0xfb   :  { %4266 = vst [vmem:[#allocation23_spill] sm:$0xff] %v3323_v3  ;;  %v3325_v26 = vadd.f32 %v227_v2, %v108_v19  ;;  %v120_v2 = vrot.slane %v103_v10, %v119_v13 }
  0xfc   :  { %v229_v62 = vpop.f32.mrf.mxu0 }
  0xfd   :  { %4267 = vst [vmem:[#allocation24_spill] sm:$0xff] %v3325_v26  ;;  %v3327_v42 = vadd.f32 %v229_v62, %v112_v24  ;;  %v3335_v26 = vadd.f32 %v310_v39, %v116_v38  ;;  %v312_v62 = vpop.f32.mrf.mxu1 }
  0xfe   :  { %v233_v61 = vpop.f32.mrf.mxu0  ;;  %v3337_v37 = vadd.f32 %v312_v62, %v120_v2 }
  0xff   :  { %4268 = vst [vmem:[#allocation25_spill] sm:$0xff] %v3327_v42  ;;  %v3331_v40 = vadd.f32 %v233_v61, %v108_v19  ;;  %v316_v61 = vpop.f32.mrf.mxu1 }
 0x100   :  { %v235_v20 = vpop.f32.mrf.mxu0  ;;  %v3339_v5 = vadd.f32 %v316_v61, %v116_v38 }
 0x101   :  { %4269 = vst [vmem:[#allocation26_spill] sm:$0xff] %v3331_v40  ;;  %v3333_v32 = vadd.f32 %v235_v20, %v112_v24  ;;  %v318_v19 = vpop.f32.mrf.mxu1 }
 0x102   :  { %v505_v3 = vpop.f32.mrf.mxu0  ;;  %4271 = vst [vmem:[#allocation28_spill] sm:$0xff] %v3339_v5  ;;  %v3341_v20 = vadd.f32 %v318_v19, %v120_v2  ;;  %v3454_v5 = vld [vmem:[%s4204_s5] ss:$0 sm:$0xff] }
 0x103   :  { %4270 = vst [vmem:[#allocation27_spill] sm:$0xff] %v3333_v32  ;;  %v580_v59 = vadd.f32 %v505_v3, %v192_v27 }
 0x104   :  { %v507_v35 = vpop.f32.mrf.mxu0  ;;  %4272 = vst [vmem:[#allocation29_spill] sm:$0xff] %v3341_v20 }
 0x105   :  { %v2012_v42 = vmul.f32 -1.442695, %v580_v59  ;;  %v581_v12 = vadd.f32 %v507_v35, %v194_v55  ;;  %v322_v41 = vpop.f32.mrf.mxu1 }
 0x106   :  { %v3343_v32 = vadd.f32 %v322_v41, %v116_v38 }
 0x107   :  { %2456 = vpow2.f32 %v2012_v42  ;;  %v2013_v3 = vmul.f32 -1.442695, %v581_v12  ;;  %v324_v39 = vpop.f32.mrf.mxu1 }
 0x108   :  { %4273 = vst [vmem:[#allocation30_spill] sm:$0xff] %v3343_v32  ;;  %v3345_v10 = vadd.f32 %v324_v39, %v120_v2 }
 0x109   :  { %2458 = vpow2.f32 %v2013_v3 }
 0x10a   :  { %4274 = vst [vmem:[#allocation31_spill] sm:$0xff] %v3345_v10  ;;  %v328_v59 = vpop.f32.mrf.mxu1 }
 0x10b   :  { %v3347_v13 = vadd.f32 %v328_v59, %v116_v38 }
 0x10c   :  { %v330_v17 = vpop.f32.mrf.mxu1 }
 0x10d   :  { %4275 = vst [vmem:[#allocation32_spill] sm:$0xff] %v3347_v13  ;;  %v3349_v42 = vadd.f32 %v330_v17, %v120_v2 }
 0x10e   :  { %v334_v24 = vpop.f32.mrf.mxu1 }
 0x10f   :  { %4276 = vst [vmem:[#allocation33_spill] sm:$0xff] %v3349_v42  ;;  %v3351_v35 = vadd.f32 %v334_v24, %v116_v38  ;;  %v3366_v24 = vld [vmem:[%s4203_s4] ss:$0 sm:$0xff] }
 0x110   :  { %v336_v62 = vpop.f32.mrf.mxu1 }
 0x111   :  { %4277 = vst [vmem:[#allocation34_spill] sm:$0xff] %v3351_v35  ;;  %v3353_v61 = vadd.f32 %v336_v62, %v120_v2 }
 0x112   :  { %v340_v12 = vpop.f32.mrf.mxu1 }
 0x113   :  { %4278 = vst [vmem:[#allocation35_spill] sm:$0xff] %v3353_v61  ;;  %v3355_v19 = vadd.f32 %v340_v12, %v116_v38 }
 0x114   :  { %v2457_v27 = vpop.eup %2456  ;;  %v342_v41 = vpop.f32.mrf.mxu1 }
 0x115   :  { %v588_v55 = vadd.f32 1.0, %v2457_v27  ;;  %4279 = vst [vmem:[#allocation36_spill] sm:$0xff] %v3355_v19  ;;  %v3357_v39 = vadd.f32 %v342_v41, %v120_v2  ;;  %v305_v41 = vadd.f32 %v304_v56, %v116_v38 }
 0x116   :  { %v346_v59 = vpop.f32.mrf.mxu1  ;;  %v2459_v40 = vpop.eup %2458 }
 0x117   :  { %2460 = vrcp.f32 %v588_v55  ;;  %4280 = vst [vmem:[#allocation37_spill] sm:$0xff] %v3357_v39  ;;  %v3359_v3 = vadd.f32 %v346_v59, %v116_v38  ;;  %v589_v55 = vadd.f32 1.0, %v2459_v40  ;;  %v307_v40 = vadd.f32 %v3329_v6, %v120_v2 }
 0x118   :  { %v348_v17 = vpop.f32.mrf.mxu1 }
 0x119   :  { %4281 = vst [vmem:[#allocation38_spill] sm:$0xff] %v3359_v3  ;;  %v3361_v42 = vadd.f32 %v348_v17, %v120_v2  ;;  %2462 = vrcp.f32 %v589_v55  ;;  %v4284_v2 = vld [vmem:[#allocation10_spill] sm:$0xff]  ;;  %v4291_v55 = vld [vmem:[#allocation8_spill] sm:$0xff] }
 0x11a   :  { %v576_v27 = vpop.f32.mrf.mxu1  ;;  %4295 = vst [vmem:[#allocation10_spill] sm:$0xff] %v3454_v5 }
 0x11b   :  { %4282 = vst [vmem:[#allocation39_spill] sm:$0xff] %v3361_v42  ;;  %v600_v62 = vadd.f32 %v3366_v24, %v576_v27  ;;  %v4290_v27 = vld [vmem:[#allocation12_spill] sm:$0xff] }
 0x11c   :  { %v2208_v12 = vpop.f32.mrf.mxu1 }
 0x11d   :  { %v4293_v12 = vld [vmem:[#allocation13_spill] sm:$0xff] }
 0x124   :  { %v2461_v19 = vpop.eup %2460 }
 0x125   :  { %v601_v39 = vmul.f32 %v2461_v19, %v600_v62  ;;  %v4287_v19 = vld [vmem:[#allocation11_spill] sm:$0xff]  ;;  %v4292_v62 = vld [vmem:[#allocation9_spill] sm:$0xff] }
 0x126   :  { %v2463_v3 = vpop.eup %2462 }
 0x127   :  { %v602_v59 = vadd.f32 %v601_v39, %v305_v41  ;;  %v604_v61 = vsub.f32 1.0, %v2463_v3  ;;  %v606_v35 = vmul.f32 %v2463_v3, %v3112_v44  ;;  %v4283_v44 = vmov 0.0   ;;  %v4288_v39 = vld [vmem:[#allocation6_spill] sm:$0xff]  ;;  %v4289_v3 = vld [vmem:[#allocation7_spill] sm:$0xff] }
 0x128   :  { %v4294_v41 = vld [vmem:[#allocation3_spill] sm:$0xff] }
 0x129   :  { %2464 = vtanh.f32 %v602_v59 }
 0x136   :  { %v2465_v17 = vpop.eup %2464 }
 0x137   :  { %v605_v42 = vmul.f32 %v2465_v17, %v604_v61  ;;  %v4286_v61 = vld [vmem:[#allocation5_spill] sm:$0xff] }
 0x139   :  { %v3370_v13 = vadd.f32 %v606_v35, %v605_v42  ;;  %v4285_v35 = vld [vmem:[#allocation4_spill] sm:$0xff] }
 0x13b   :  { %680 = vmatmul.mubr.f32.vlgmr.msra.gmra.mxu0 %v3370_v13  ;;  %2242 = vmatmul.mubr.f32.vlgmr.msra.gmra.mxu1 %v3370_v13  ;;  %vm1815_vm1 = vcmp.ge.f32.partialorder %v3370_v13, 0.0  ;;  %v1823_v56 = vmul.f32 0.01, %v3370_v13 }
 0x13c   :  { %787 = vmatpush1.msra.mxu0 %v2832_v57  ;;  %2245 = vmatpush3.msra.mxu1 %v3060_v36 }
 0x13d   :  { %v1831_v38 = vsel %vm1815_vm1, %v3370_v13, %v1823_v56  ;;  %788 = vmatprep.subr.mxu0 %v2837_v58  ;;  %2246 = vmatprep.subr.mxu1 %v4283_v44 }
 0x13e   :  { %v3382_v42 = vadd.f32 %v1831_v38, %v307_v40  ;;  %789 = vmatpush1.msra.mxu0 %v2847_v60  ;;  %2247 = vmatpush3.msra.mxu1 %v3105_v43 }
 0x13f   :  { %790 = vmatprep.subr.mxu0 %v2862_v63  ;;  %2248 = vmatprep.subr.mxu1 %v4283_v44 }
 0x140   :  { %1855 = vadd.xlane.f32.xlu0 %v3382_v42  ;;  %791 = vmatpush1.msra.mxu0 %v2868_v0  ;;  %v1879_v6 = vmul.f32 %v3382_v42, %v3382_v42 }
 0x141   :  { %2249 = vmatpush3.msra.mxu1 %v3121_v45  ;;  %792 = vmatprep.subr.mxu0 %v2874_v1 }
 0x142   :  { %2250 = vmatprep.subr.mxu1 %v4283_v44  ;;  %793 = vmatpush1.msra.mxu0 %v2884_v4 }
 0x143   :  { %2251 = vmatpush3.msra.mxu1 %v3130_v46  ;;  %794 = vmatprep.subr.mxu0 %v2899_v7 }
 0x144   :  { %1887 = vadd.xlane.f32.xlu0 %v1879_v6  ;;  %2252 = vmatprep.subr.mxu1 %v4283_v44 }
 0x145   :  { %795 = vmatpush1.msra.mxu0 %v2905_v8  ;;  %2253 = vmatpush3.msra.mxu1 %v3138_v47 }
 0x146   :  { %796 = vmatprep.subr.mxu0 %v2911_v9  ;;  %2254 = vmatprep.subr.mxu1 %v4283_v44 }
 0x147   :  { %797 = vmatpush1.msra.mxu0 %v2921_v11  ;;  %2255 = vmatpush3.msra.mxu1 %v3148_v48 }
 0x148   :  { %798 = vmatprep.subr.mxu0 %v2936_v14  ;;  %2256 = vmatprep.subr.mxu1 %v4283_v44 }
 0x149   :  { %799 = vmatpush1.msra.mxu0 %v2942_v15  ;;  %2257 = vmatpush3.msra.mxu1 %v3156_v49 }
 0x14a   :  { %800 = vmatprep.subr.mxu0 %v2948_v16  ;;  %2258 = vmatprep.subr.mxu1 %v4283_v44 }
 0x14b   :  { %801 = vmatpush1.msra.mxu0 %v2958_v18  ;;  %2259 = vmatpush3.msra.mxu1 %v3166_v50 }
 0x14c   :  { %802 = vmatprep.subr.mxu0 %v2973_v21  ;;  %2260 = vmatprep.subr.mxu1 %v4283_v44 }
 0x14d   :  { %803 = vmatpush1.msra.mxu0 %v2979_v22  ;;  %2261 = vmatpush3.msra.mxu1 %v3174_v51 }
 0x14e   :  { %804 = vmatprep.subr.mxu0 %v2985_v23  ;;  %2262 = vmatprep.subr.mxu1 %v4283_v44 }
 0x14f   :  { %805 = vmatpush1.msra.mxu0 %v2995_v25  ;;  %2263 = vmatpush3.msra.mxu1 %v3184_v52 }
 0x150   :  { %806 = vmatprep.subr.mxu0 %v3010_v28  ;;  %2264 = vmatprep.subr.mxu1 %v4283_v44 }
 0x151   :  { %807 = vmatpush1.msra.mxu0 %v3016_v29  ;;  %2265 = vmatpush3.msra.mxu1 %v3192_v53 }
 0x152   :  { %808 = vmatprep.subr.mxu0 %v3022_v30  ;;  %2266 = vmatprep.subr.mxu1 %v4283_v44 }
 0x153   :  { %809 = vmatpush1.msra.mxu0 %v3029_v31  ;;  %2267 = vmatpush3.msra.mxu1 %v3202_v54 }
 0x154   :  { %810 = vmatprep.subr.mxu0 %v3041_v33  ;;  %2268 = vmatprep.subr.mxu1 %v4283_v44 }
 0x155   :  { %811 = vmatpush1.msra.mxu0 %v3047_v34  ;;  %2269 = vmatpush3.msra.mxu1 %v4284_v2 }
 0x156   :  { %812 = vmatprep.subr.mxu0 %v4285_v35  ;;  %2270 = vmatprep.subr.mxu1 %v4283_v44 }
 0x157   :  { %813 = vmatpush1.msra.mxu0 %v4286_v61  ;;  %2271 = vmatpush3.msra.mxu1 %v4287_v19 }
 0x158   :  { %814 = vmatprep.subr.mxu0 %v4288_v39  ;;  %2272 = vmatprep.subr.mxu1 %v4283_v44 }
 0x159   :  { %815 = vmatpush1.msra.mxu0 %v4289_v3  ;;  %2273 = vmatpush3.msra.mxu1 %v4290_v27 }
 0x15a   :  { %816 = vmatprep.subr.mxu0 %v4291_v55  ;;  %2274 = vmatprep.subr.mxu1 %v4283_v44 }
 0x15b   :  { %817 = vmatpush1.msra.mxu0 %v4292_v62  ;;  %850 = vmatprep.mubr.f32.mxu0 %v4283_v44 }
 0x15c   :  { %2275 = vmatpush3.msra.mxu1 %v4293_v12  ;;  %2276 = vmatprep.mubr.msk.f32.mxu1 %vm2604_vm0, %v4283_v44 }
 0x15d   :  { %957 = vmatprep.subr.mxu0 %v4294_v41  ;;  %2279 = vmatprep.subr.mxu1 %v4283_v44  ;;  %v3459_v41 = vld [vmem:[%s4205_s6] ss:$0 sm:$0xff] }
 0x15e   :  { %4296 = vst [vmem:[#allocation4_spill] sm:$0xff] %v3459_v41 }
 0x1c9   :  { %v1856_v59 = vpop.xlane.xlu0 %1855 }
 0x1ca   :  { %v1871_v17 = vmul.f32 0.03125, %v1856_v59 }
 0x1cc   :  { %v1911_v40 = vmul.f32 %v1871_v17, %v1871_v17  ;;  %v1927_v32 = vsub.f32 %v3382_v42, %v1871_v17  ;;  %v4297_v17 = vld [vmem:[#allocation14_spill] sm:$0xff] }
 0x1cd   :  { %v1888_v56 = vpop.xlane.xlu0 %1887 }
 0x1ce   :  { %v1903_v38 = vmul.f32 0.03125, %v1888_v56 }
 0x1d0   :  { %v1919_v6 = vsub.f32 %v1903_v38, %v1911_v40 }
 0x1d2   :  { %v1935_v10 = vadd.f32 1e-05, %v1919_v6 }
 0x1d4   :  { %2466 = vrsqrt.f32 %v1935_v10 }
 0x1e1   :  { %v2467_v20 = vpop.eup %2466 }
 0x1e2   :  { %v1951_v12 = vmul.f32 %v2467_v20, %v1927_v32  ;;  %v4298_v20 = vld [vmem:[#allocation15_spill] sm:$0xff] }
 0x1e4   :  { %v1966_v59 = vmul.f32 %v3454_v5, %v1951_v12 }
 0x1e6   :  { %v1981_v56 = vadd.f32 %v3459_v41, %v1966_v59 }
 0x1e8   :  { %1989 = vst [vmem:[%s4206_s8] sm:$0xff] %v1981_v56 }
 0x1fb   :  { %v681_v10 = vpop.f32.mrf.mxu0  ;;  %v752_v42 = vpop.f32.mrf.mxu1 }
 0x1fc   :  { %v756_v40 = vadd.f32 %v681_v10, %v4297_v17  ;;  %v770_v5 = vadd.f32 %v3366_v24, %v752_v42 }
 0x1fd   :  { %v2243_v38 = vpop.f32.mrf.mxu1  ;;  %v683_v32 = vpop.f32.mrf.mxu0 }
 0x1fe   :  { %v2015_v6 = vmul.f32 -1.442695, %v756_v40  ;;  %v757_v62 = vadd.f32 %v683_v32, %v4298_v20 }
 0x200   :  { %2468 = vpow2.f32 %v2015_v6  ;;  %v2016_v55 = vmul.f32 -1.442695, %v757_v62 }
 0x202   :  { %2470 = vpow2.f32 %v2016_v55 }
 0x20d   :  { %v2469_v27 = vpop.eup %2468 }
 0x20e   :  { %v764_v12 = vadd.f32 1.0, %v2469_v27 }
 0x20f   :  { %v2471_v59 = vpop.eup %2470 }
 0x210   :  { %2472 = vrcp.f32 %v764_v12  ;;  %v765_v41 = vadd.f32 1.0, %v2471_v59 }
 0x212   :  { %2474 = vrcp.f32 %v765_v41 }
 0x21d   :  { %v2473_v56 = vpop.eup %2472 }
 0x21e   :  { %v771_v3 = vmul.f32 %v2473_v56, %v770_v5 }
 0x21f   :  { %v2475_v17 = vpop.eup %2474 }
 0x220   :  { %v772_v10 = vadd.f32 %v771_v3, %v3335_v26  ;;  %v774_v40 = vsub.f32 1.0, %v2475_v17  ;;  %v776_v62 = vmul.f32 %v2475_v17, %v3370_v13 }
 0x222   :  { %2476 = vtanh.f32 %v772_v10  ;;  %v4309_v10 = vld [vmem:[#allocation28_spill] sm:$0xff] }
 0x22f   :  { %v2477_v38 = vpop.eup %2476 }
 0x230   :  { %v775_v6 = vmul.f32 %v2477_v38, %v774_v40 }
 0x232   :  { %v3471_v55 = vadd.f32 %v776_v62, %v775_v6 }
 0x234   :  { %851 = vmatmul.mubr.f32.vlgmr.msra.gmra.mxu0 %v3471_v55  ;;  %2277 = vmatmul.mubr.f32.vlgmr.msra.gmra.mxu1 %v3471_v55  ;;  %vm1816_vm2 = vcmp.ge.f32.partialorder %v3471_v55, 0.0  ;;  %v1824_v5 = vmul.f32 0.01, %v3471_v55 }
 0x235   :  { %958 = vmatpush1.msra.mxu0 %v2832_v57  ;;  %2280 = vmatpush3.msra.mxu1 %v3060_v36 }
 0x236   :  { %v1832_v26 = vsel %vm1816_vm2, %v3471_v55, %v1824_v5  ;;  %959 = vmatprep.subr.mxu0 %v2837_v58  ;;  %2281 = vmatprep.subr.mxu1 %v4283_v44  ;;  %v4299_v58 = vld [vmem:[#allocation7_spill] sm:$0xff] }
 0x237   :  { %v3483_v13 = vadd.f32 %v1832_v26, %v3337_v37  ;;  %960 = vmatpush1.msra.mxu0 %v2847_v60  ;;  %2282 = vmatpush3.msra.mxu1 %v3105_v43  ;;  %v4300_v60 = vld [vmem:[#allocation12_spill] sm:$0xff] }
 0x238   :  { %961 = vmatprep.subr.mxu0 %v2862_v63  ;;  %2283 = vmatprep.subr.mxu1 %v4283_v44  ;;  %v4301_v63 = vld [vmem:[#allocation8_spill] sm:$0xff] }
 0x239   :  { %1857 = vadd.xlane.f32.xlu0 %v3483_v13  ;;  %v1880_v57 = vmul.f32 %v3483_v13, %v3483_v13  ;;  %962 = vmatpush1.msra.mxu0 %v2868_v0  ;;  %v4302_v0 = vld [vmem:[#allocation9_spill] sm:$0xff] }
 0x23a   :  { %2284 = vmatpush3.msra.mxu1 %v3121_v45  ;;  %963 = vmatprep.subr.mxu0 %v2874_v1  ;;  %v4303_v1 = vld [vmem:[#allocation13_spill] sm:$0xff] }
 0x23b   :  { %1889 = vadd.xlane.f32.xlu1 %v1880_v57  ;;  %2285 = vmatprep.subr.mxu1 %v4283_v44  ;;  %v3576_v57 = vld [vmem:[%s4200_s2 + $0x168] sm:$0xff] }
 0x23c   :  { %964 = vmatpush1.msra.mxu0 %v2884_v4  ;;  %2286 = vmatpush3.msra.mxu1 %v3130_v46  ;;  %v3552_v4 = vld [vmem:[%s4200_s2 + $0x170] sm:$0xff] }
 0x23d   :  { %965 = vmatprep.subr.mxu0 %v2899_v7  ;;  %2287 = vmatprep.subr.mxu1 %v4283_v44  ;;  %4304 = vst [vmem:[#allocation5_spill] sm:$0xff] %v3552_v4 }
 0x23e   :  { %966 = vmatpush1.msra.mxu0 %v2905_v8  ;;  %2288 = vmatpush3.msra.mxu1 %v3138_v47 }
 0x23f   :  { %967 = vmatprep.subr.mxu0 %v2911_v9  ;;  %2289 = vmatprep.subr.mxu1 %v4283_v44 }
 0x240   :  { %968 = vmatpush1.msra.mxu0 %v2921_v11  ;;  %2290 = vmatpush3.msra.mxu1 %v3148_v48 }
 0x241   :  { %969 = vmatprep.subr.mxu0 %v2936_v14  ;;  %2291 = vmatprep.subr.mxu1 %v4283_v44 }
 0x242   :  { %970 = vmatpush1.msra.mxu0 %v2942_v15  ;;  %2292 = vmatpush3.msra.mxu1 %v3156_v49 }
 0x243   :  { %971 = vmatprep.subr.mxu0 %v2948_v16  ;;  %2293 = vmatprep.subr.mxu1 %v4283_v44 }
 0x244   :  { %972 = vmatpush1.msra.mxu0 %v2958_v18  ;;  %2294 = vmatpush3.msra.mxu1 %v3166_v50 }
 0x245   :  { %973 = vmatprep.subr.mxu0 %v2973_v21  ;;  %2295 = vmatprep.subr.mxu1 %v4283_v44 }
 0x246   :  { %974 = vmatpush1.msra.mxu0 %v2979_v22  ;;  %2296 = vmatpush3.msra.mxu1 %v3174_v51 }
 0x247   :  { %975 = vmatprep.subr.mxu0 %v2985_v23  ;;  %2297 = vmatprep.subr.mxu1 %v4283_v44  ;;  %v4305_v23 = vld [vmem:[#allocation10_spill] sm:$0xff] }
 0x248   :  { %976 = vmatpush1.msra.mxu0 %v2995_v25  ;;  %2298 = vmatpush3.msra.mxu1 %v3184_v52 }
 0x249   :  { %977 = vmatprep.subr.mxu0 %v3010_v28  ;;  %2299 = vmatprep.subr.mxu1 %v4283_v44  ;;  %v4306_v28 = vld [vmem:[#allocation4_spill] sm:$0xff] }
 0x24a   :  { %978 = vmatpush1.msra.mxu0 %v3016_v29  ;;  %2300 = vmatpush3.msra.mxu1 %v3192_v53 }
 0x24b   :  { %979 = vmatprep.subr.mxu0 %v3022_v30  ;;  %2301 = vmatprep.subr.mxu1 %v4283_v44 }
 0x24c   :  { %980 = vmatpush1.msra.mxu0 %v3029_v31  ;;  %2302 = vmatpush3.msra.mxu1 %v3202_v54 }
 0x24d   :  { %981 = vmatprep.subr.mxu0 %v3041_v33  ;;  %2303 = vmatprep.subr.mxu1 %v4283_v44  ;;  %v4307_v33 = vld [vmem:[#allocation16_spill] sm:$0xff] }
 0x24e   :  { %982 = vmatpush1.msra.mxu0 %v3047_v34  ;;  %2304 = vmatpush3.msra.mxu1 %v4284_v2 }
 0x24f   :  { %983 = vmatprep.subr.mxu0 %v4285_v35  ;;  %2305 = vmatprep.subr.mxu1 %v4283_v44 }
 0x250   :  { %984 = vmatpush1.msra.mxu0 %v4286_v61  ;;  %2306 = vmatpush3.msra.mxu1 %v4287_v19 }
 0x251   :  { %985 = vmatprep.subr.mxu0 %v4288_v39  ;;  %2307 = vmatprep.subr.mxu1 %v4283_v44  ;;  %v4308_v39 = vld [vmem:[#allocation17_spill] sm:$0xff] }
 0x252   :  { %986 = vmatpush1.msra.mxu0 %v4299_v58  ;;  %2308 = vmatpush3.msra.mxu1 %v4300_v60  ;;  %v3584_v58 = vld [vmem:[%s4200_s2 + $0x158] sm:$0xff] }
 0x253   :  { %987 = vmatprep.subr.mxu0 %v4301_v63  ;;  %2309 = vmatprep.subr.mxu1 %v4283_v44  ;;  %v4310_v63 = vld [vmem:[#allocation29_spill] sm:$0xff] }
 0x254   :  { %988 = vmatpush1.msra.mxu0 %v4302_v0  ;;  %1021 = vmatprep.mubr.f32.mxu0 %v4283_v44 }
 0x255   :  { %2310 = vmatpush3.msra.mxu1 %v4303_v1  ;;  %2311 = vmatprep.mubr.msk.f32.mxu1 %vm2604_vm0, %v4283_v44 }
 0x256   :  { %1128 = vmatprep.subr.mxu0 %v3552_v4  ;;  %2314 = vmatprep.subr.mxu1 %v4283_v44 }
 0x2c2   :  { %v1858_v7 = vpop.xlane.xlu0 %1857 }
 0x2c3   :  { %v1872_v8 = vmul.f32 0.03125, %v1858_v7  ;;  %v3594_v7 = vld [vmem:[%s4200_s2 + $0x150] sm:$0xff] }
 0x2c4   :  { %v1890_v9 = vpop.xlane.xlu1 %1889 }
 0x2c5   :  { %v1912_v11 = vmul.f32 %v1872_v8, %v1872_v8  ;;  %v1904_v14 = vmul.f32 0.03125, %v1890_v9  ;;  %v1928_v18 = vsub.f32 %v3483_v13, %v1872_v8  ;;  %v3611_v9 = vld [vmem:[%s4200_s2 + $0x138] sm:$0xff] }
 0x2c7   :  { %v1920_v15 = vsub.f32 %v1904_v14, %v1912_v11  ;;  %v3625_v11 = vld [vmem:[%s4200_s2 + $0x120] sm:$0xff]  ;;  %v3639_v14 = vld [vmem:[%s4200_s2 + $0x108] sm:$0xff] }
 0x2c9   :  { %v1936_v16 = vadd.f32 1e-05, %v1920_v15  ;;  %v3653_v15 = vld [vmem:[%s4200_s2 + $0xf0] sm:$0xff] }
 0x2cb   :  { %2478 = vrsqrt.f32 %v1936_v16  ;;  %v3667_v16 = vld [vmem:[%s4200_s2 + $0xd8] sm:$0xff] }
 0x2d8   :  { %v2479_v21 = vpop.eup %2478 }
 0x2d9   :  { %v1952_v22 = vmul.f32 %v2479_v21, %v1928_v18  ;;  %v3681_v18 = vld [vmem:[%s4200_s2 + $0xc0] sm:$0xff]  ;;  %v3695_v21 = vld [vmem:[%s4200_s2 + $0xa8] sm:$0xff] }
 0x2db   :  { %v1967_v25 = vmul.f32 %v4305_v23, %v1952_v22  ;;  %v3709_v22 = vld [vmem:[%s4200_s2 + $0x90] sm:$0xff] }
 0x2dd   :  { %v1982_v29 = vadd.f32 %v4306_v28, %v1967_v25  ;;  %v3723_v25 = vld [vmem:[%s4200_s2 + $0x78] sm:$0xff] }
 0x2df   :  { %1990 = vst [vmem:[%s4206_s8 + $0x8] sm:$0xff] %v1982_v29  ;;  %v3737_v29 = vld [vmem:[%s4200_s2 + $0x60] sm:$0xff] }
 0x2f4   :  { %v852_v30 = vpop.f32.mrf.mxu0  ;;  %v923_v31 = vpop.f32.mrf.mxu1 }
 0x2f5   :  { %v927_v34 = vadd.f32 %v852_v30, %v4307_v33  ;;  %v941_v12 = vadd.f32 %v3366_v24, %v923_v31  ;;  %v3751_v30 = vld [vmem:[%s4200_s2 + $0x48] sm:$0xff]  ;;  %v3765_v31 = vld [vmem:[%s4200_s2 + $0x30] sm:$0xff]  ;;  %v3779_v33 = vld [vmem:[%s4200_s2 + $0x18] sm:$0xff] }
 0x2f6   :  { %v2278_v37 = vpop.f32.mrf.mxu1  ;;  %v854_v61 = vpop.f32.mrf.mxu0 }
 0x2f7   :  { %v2018_v35 = vmul.f32 -1.442695, %v927_v34  ;;  %v928_v3 = vadd.f32 %v854_v61, %v4308_v39  ;;  %v3793_v34 = vld [vmem:[%s4200_s2] sm:$0xff] }
 0x2f8   :  { %4312 = vst [vmem:[#allocation6_spill] sm:$0xff] %v3793_v34 }
 0x2f9   :  { %2480 = vpow2.f32 %v2018_v35  ;;  %v2019_v27 = vmul.f32 -1.442695, %v928_v3 }
 0x2fb   :  { %2482 = vpow2.f32 %v2019_v27 }
 0x306   :  { %v2481_v41 = vpop.eup %2480 }
 0x307   :  { %v935_v42 = vadd.f32 1.0, %v2481_v41 }
 0x308   :  { %v2483_v32 = vpop.eup %2482 }
 0x309   :  { %2484 = vrcp.f32 %v935_v42  ;;  %v936_v20 = vadd.f32 1.0, %v2483_v32 }
 0x30b   :  { %2486 = vrcp.f32 %v936_v20 }
 0x316   :  { %v2485_v59 = vpop.eup %2484 }
 0x317   :  { %v942_v56 = vmul.f32 %v2485_v59, %v941_v12 }
 0x318   :  { %v2487_v40 = vpop.eup %2486 }
 0x319   :  { %v943_v17 = vadd.f32 %v942_v56, %v4309_v10  ;;  %v945_v38 = vsub.f32 1.0, %v2487_v40  ;;  %v947_v5 = vmul.f32 %v2487_v40, %v3471_v55  ;;  %v4313_v56 = vld [vmem:[#allocation18_spill] sm:$0xff] }
 0x31b   :  { %2488 = vtanh.f32 %v943_v17 }
 0x328   :  { %v2489_v6 = vpop.eup %2488 }
 0x329   :  { %v946_v62 = vmul.f32 %v2489_v6, %v945_v38  ;;  %v4314_v6 = vld [vmem:[#allocation19_spill] sm:$0xff] }
 0x32b   :  { %v3567_v26 = vadd.f32 %v947_v5, %v946_v62 }
 0x32d   :  { %1022 = vmatmul.mubr.f32.vlgmr.msra.gmra.mxu0 %v3567_v26  ;;  %2312 = vmatmul.mubr.f32.vlgmr.msra.gmra.mxu1 %v3567_v26  ;;  %vm1817_vm3 = vcmp.ge.f32.partialorder %v3567_v26, 0.0  ;;  %v1825_v13 = vmul.f32 0.01, %v3567_v26 }
 0x32e   :  { %1129 = vmatpush1.msra.mxu0 %v3576_v57  ;;  %2315 = vmatpush3.msra.mxu1 %v3060_v36  ;;  %v3601_v36 = vld [vmem:[%s4200_s2 + $0x140] sm:$0xff] }
 0x32f   :  { %v1833_v55 = vsel %vm1817_vm3, %v3567_v26, %v1825_v13  ;;  %1130 = vmatprep.subr.mxu0 %v3584_v58  ;;  %2316 = vmatprep.subr.mxu1 %v4283_v44 }
 0x330   :  { %v3589_v0 = vadd.f32 %v1833_v55, %v4310_v63  ;;  %1131 = vmatpush1.msra.mxu0 %v3594_v7  ;;  %2317 = vmatpush3.msra.mxu1 %v3105_v43  ;;  %v3618_v43 = vld [vmem:[%s4200_s2 + $0x128] sm:$0xff] }
 0x331   :  { %1132 = vmatprep.subr.mxu0 %v3601_v36  ;;  %2318 = vmatprep.subr.mxu1 %v4283_v44 }
 0x332   :  { %1859 = vadd.xlane.f32.xlu1 %v3589_v0  ;;  %v1881_v8 = vmul.f32 %v3589_v0, %v3589_v0  ;;  %1133 = vmatpush1.msra.mxu0 %v3611_v9 }
 0x333   :  { %2319 = vmatpush3.msra.mxu1 %v3121_v45  ;;  %1134 = vmatprep.subr.mxu0 %v3618_v43  ;;  %v3632_v45 = vld [vmem:[%s4200_s2 + $0x110] sm:$0xff] }
 0x334   :  { %1891 = vadd.xlane.f32.xlu0 %v1881_v8  ;;  %2320 = vmatprep.subr.mxu1 %v4283_v44 }
 0x335   :  { %1135 = vmatpush1.msra.mxu0 %v3625_v11  ;;  %2321 = vmatpush3.msra.mxu1 %v3130_v46  ;;  %v3646_v46 = vld [vmem:[%s4200_s2 + $0xf8] sm:$0xff] }
 0x336   :  { %1136 = vmatprep.subr.mxu0 %v3632_v45  ;;  %2322 = vmatprep.subr.mxu1 %v4283_v44 }
 0x337   :  { %1137 = vmatpush1.msra.mxu0 %v3639_v14  ;;  %2323 = vmatpush3.msra.mxu1 %v3138_v47  ;;  %v3660_v47 = vld [vmem:[%s4200_s2 + $0xe0] sm:$0xff] }
 0x338   :  { %1138 = vmatprep.subr.mxu0 %v3646_v46  ;;  %2324 = vmatprep.subr.mxu1 %v4283_v44 }
 0x339   :  { %1139 = vmatpush1.msra.mxu0 %v3653_v15  ;;  %2325 = vmatpush3.msra.mxu1 %v3148_v48  ;;  %v3674_v48 = vld [vmem:[%s4200_s2 + $0xc8] sm:$0xff] }
 0x33a   :  { %1140 = vmatprep.subr.mxu0 %v3660_v47  ;;  %2326 = vmatprep.subr.mxu1 %v4283_v44 }
 0x33b   :  { %1141 = vmatpush1.msra.mxu0 %v3667_v16  ;;  %2327 = vmatpush3.msra.mxu1 %v3156_v49  ;;  %v3688_v49 = vld [vmem:[%s4200_s2 + $0xb0] sm:$0xff] }
 0x33c   :  { %1142 = vmatprep.subr.mxu0 %v3674_v48  ;;  %2328 = vmatprep.subr.mxu1 %v4283_v44 }
 0x33d   :  { %1143 = vmatpush1.msra.mxu0 %v3681_v18  ;;  %2329 = vmatpush3.msra.mxu1 %v3166_v50  ;;  %v3702_v50 = vld [vmem:[%s4200_s2 + $0x98] sm:$0xff] }
 0x33e   :  { %1144 = vmatprep.subr.mxu0 %v3688_v49  ;;  %2330 = vmatprep.subr.mxu1 %v4283_v44 }
 0x33f   :  { %1145 = vmatpush1.msra.mxu0 %v3695_v21  ;;  %2331 = vmatpush3.msra.mxu1 %v3174_v51  ;;  %v3716_v51 = vld [vmem:[%s4200_s2 + $0x80] sm:$0xff] }
 0x340   :  { %1146 = vmatprep.subr.mxu0 %v3702_v50  ;;  %2332 = vmatprep.subr.mxu1 %v4283_v44 }
 0x341   :  { %1147 = vmatpush1.msra.mxu0 %v3709_v22  ;;  %2333 = vmatpush3.msra.mxu1 %v3184_v52  ;;  %v3730_v52 = vld [vmem:[%s4200_s2 + $0x68] sm:$0xff] }
 0x342   :  { %1148 = vmatprep.subr.mxu0 %v3716_v51  ;;  %2334 = vmatprep.subr.mxu1 %v4283_v44 }
 0x343   :  { %1149 = vmatpush1.msra.mxu0 %v3723_v25  ;;  %2335 = vmatpush3.msra.mxu1 %v3192_v53  ;;  %v3744_v53 = vld [vmem:[%s4200_s2 + $0x50] sm:$0xff] }
 0x344   :  { %1150 = vmatprep.subr.mxu0 %v3730_v52  ;;  %2336 = vmatprep.subr.mxu1 %v4283_v44 }
 0x345   :  { %1151 = vmatpush1.msra.mxu0 %v3737_v29  ;;  %2337 = vmatpush3.msra.mxu1 %v3202_v54  ;;  %v3758_v54 = vld [vmem:[%s4200_s2 + $0x38] sm:$0xff] }
 0x346   :  { %1152 = vmatprep.subr.mxu0 %v3744_v53  ;;  %2338 = vmatprep.subr.mxu1 %v4283_v44 }
 0x347   :  { %1153 = vmatpush1.msra.mxu0 %v3751_v30  ;;  %2339 = vmatpush3.msra.mxu1 %v4284_v2  ;;  %v3772_v2 = vld [vmem:[%s4200_s2 + $0x20] sm:$0xff] }
 0x348   :  { %1154 = vmatprep.subr.mxu0 %v3758_v54  ;;  %2340 = vmatprep.subr.mxu1 %v4283_v44 }
 0x349   :  { %1155 = vmatpush1.msra.mxu0 %v3765_v31  ;;  %2341 = vmatpush3.msra.mxu1 %v4287_v19  ;;  %v3786_v19 = vld [vmem:[%s4200_s2 + $0x8] sm:$0xff] }
 0x34a   :  { %1156 = vmatprep.subr.mxu0 %v3772_v2  ;;  %2342 = vmatprep.subr.mxu1 %v4283_v44  ;;  %4311 = vst [vmem:[#allocation11_spill] sm:$0xff] %v3786_v19 }
 0x34b   :  { %1157 = vmatpush1.msra.mxu0 %v3779_v33  ;;  %2343 = vmatpush3.msra.mxu1 %v4300_v60 }
 0x34c   :  { %1158 = vmatprep.subr.mxu0 %v3786_v19  ;;  %2344 = vmatprep.subr.mxu1 %v4283_v44 }
 0x34d   :  { %1159 = vmatpush1.msra.mxu0 %v3793_v34  ;;  %1192 = vmatprep.mubr.f32.mxu0 %v4283_v44 }
 0x34e   :  { %2345 = vmatpush3.msra.mxu1 %v4303_v1  ;;  %2346 = vmatprep.mubr.msk.f32.mxu1 %vm2604_vm0, %v4283_v44 }
 0x34f   :  { %1299 = vmatprep.subr.mxu0 %v3552_v4  ;;  %2349 = vmatprep.subr.mxu1 %v4283_v44 }
 0x3bb   :  { %v1860_v60 = vpop.xlane.xlu1 %1859 }
 0x3bc   :  { %v1873_v37 = vmul.f32 0.03125, %v1860_v60 }
 0x3bd   :  { %v1892_v35 = vpop.xlane.xlu0 %1891 }
 0x3be   :  { %v1913_v61 = vmul.f32 %v1873_v37, %v1873_v37  ;;  %v1905_v39 = vmul.f32 0.03125, %v1892_v35  ;;  %v1929_v41 = vsub.f32 %v3589_v0, %v1873_v37  ;;  %v4315_v35 = vld [vmem:[#allocation30_spill] sm:$0xff] }
 0x3c0   :  { %v1921_v3 = vsub.f32 %v1905_v39, %v1913_v61 }
 0x3c2   :  { %v1937_v27 = vadd.f32 1e-05, %v1921_v3 }
 0x3c4   :  { %2490 = vrsqrt.f32 %v1937_v27 }
 0x3d1   :  { %v2491_v42 = vpop.eup %2490 }
 0x3d2   :  { %v1953_v32 = vmul.f32 %v2491_v42, %v1929_v41 }
 0x3d4   :  { %v1968_v1 = vmul.f32 %v4305_v23, %v1953_v32 }
 0x3d6   :  { %v1983_v20 = vadd.f32 %v4306_v28, %v1968_v1 }
 0x3d8   :  { %1991 = vst [vmem:[%s4206_s8 + $0x10] sm:$0xff] %v1983_v20  ;;  %v3823_v20 = vld [vmem:[%s4200_s2 + $0x178] sm:$0xff] }
 0x3ed   :  { %v1023_v12 = vpop.f32.mrf.mxu0  ;;  %v1094_v59 = vpop.f32.mrf.mxu1 }
 0x3ee   :  { %v1098_v10 = vadd.f32 %v1023_v12, %v4313_v56  ;;  %v1112_v8 = vadd.f32 %v3366_v24, %v1094_v59  ;;  %v4316_v12 = vld [vmem:[#allocation31_spill] sm:$0xff] }
 0x3ef   :  { %v2313_v17 = vpop.f32.mrf.mxu1  ;;  %v1025_v38 = vpop.f32.mrf.mxu0  ;;  %v3836_v56 = vld [vmem:[%s4200_s2 + $0x160] sm:$0xff] }
 0x3f0   :  { %v2021_v40 = vmul.f32 -1.442695, %v1098_v10  ;;  %v1099_v62 = vadd.f32 %v1025_v38, %v4314_v6  ;;  %v3846_v10 = vld [vmem:[%s4200_s2 + $0x148] sm:$0xff]  ;;  %v3866_v38 = vld [vmem:[%s4200_s2 + $0x118] sm:$0xff]  ;;  %v3875_v6 = vld [vmem:[%s4200_s2 + $0x100] sm:$0xff] }
 0x3f2   :  { %2492 = vpow2.f32 %v2021_v40  ;;  %v2022_v5 = vmul.f32 -1.442695, %v1099_v62  ;;  %v3857_v40 = vld [vmem:[%s4200_s2 + $0x130] sm:$0xff]  ;;  %v3884_v62 = vld [vmem:[%s4200_s2 + $0xe8] sm:$0xff] }
 0x3f4   :  { %2494 = vpow2.f32 %v2022_v5  ;;  %v3893_v5 = vld [vmem:[%s4200_s2 + $0xd0] sm:$0xff] }
 0x3ff   :  { %v2493_v13 = vpop.eup %2492 }
 0x400   :  { %v1106_v55 = vadd.f32 1.0, %v2493_v13  ;;  %v3902_v13 = vld [vmem:[%s4200_s2 + $0xb8] sm:$0xff] }
 0x401   :  { %v2495_v63 = vpop.eup %2494 }
 0x402   :  { %2496 = vrcp.f32 %v1106_v55  ;;  %v1107_v0 = vadd.f32 1.0, %v2495_v63  ;;  %v3911_v55 = vld [vmem:[%s4200_s2 + $0xa0] sm:$0xff]  ;;  %v3920_v63 = vld [vmem:[%s4200_s2 + $0x88] sm:$0xff] }
 0x404   :  { %2498 = vrcp.f32 %v1107_v0  ;;  %v3929_v0 = vld [vmem:[%s4200_s2 + $0x70] sm:$0xff] }
 0x40f   :  { %v2497_v60 = vpop.eup %2496 }
 0x410   :  { %v1113_v37 = vmul.f32 %v2497_v60, %v1112_v8  ;;  %v3938_v8 = vld [vmem:[%s4200_s2 + $0x58] sm:$0xff]  ;;  %v3947_v60 = vld [vmem:[%s4200_s2 + $0x40] sm:$0xff] }
 0x411   :  { %v2499_v39 = vpop.eup %2498 }
 0x412   :  { %v1114_v61 = vadd.f32 %v1113_v37, %v4315_v35  ;;  %v1116_v3 = vsub.f32 1.0, %v2499_v39  ;;  %v1118_v42 = vmul.f32 %v2499_v39, %v3567_v26  ;;  %v3956_v37 = vld [vmem:[%s4200_s2 + $0x28] sm:$0xff]  ;;  %v3966_v35 = vld [vmem:[%s4200_s2 + $0x10] sm:$0xff] }
 0x413   :  { %4317 = vst [vmem:[#allocation3_spill] sm:$0xff] %v3956_v37  ;;  %4318 = vst [vmem:[#allocation14_spill] sm:$0xff] %v3966_v35 }
 0x414   :  { %2500 = vtanh.f32 %v1114_v61 }
 0x421   :  { %v2501_v27 = vpop.eup %2500 }
 0x422   :  { %v1117_v41 = vmul.f32 %v2501_v27, %v1116_v3 }
 0x424   :  { %v3813_v32 = vadd.f32 %v1118_v42, %v1117_v41 }
 0x426   :  { %1193 = vmatmul.mubr.f32.vlgmr.msra.gmra.mxu0 %v3813_v32  ;;  %2347 = vmatmul.mubr.f32.vlgmr.msra.gmra.mxu1 %v3813_v32  ;;  %vm1818_vm4 = vcmp.ge.f32.partialorder %v3813_v32, 0.0  ;;  %v1826_v1 = vmul.f32 0.01, %v3813_v32 }
 0x427   :  { %1300 = vmatpush1.msra.mxu0 %v3576_v57  ;;  %2350 = vmatpush3.msra.mxu1 %v3823_v20 }
 0x428   :  { %v1834_v26 = vsel %vm1818_vm4, %v3813_v32, %v1826_v1  ;;  %1301 = vmatprep.subr.mxu0 %v3584_v58  ;;  %2351 = vmatprep.subr.mxu1 %v4283_v44 }
 0x429   :  { %v3830_v59 = vadd.f32 %v1834_v26, %v4316_v12  ;;  %1302 = vmatpush1.msra.mxu0 %v3594_v7  ;;  %2352 = vmatpush3.msra.mxu1 %v3836_v56 }
 0x42a   :  { %1303 = vmatprep.subr.mxu0 %v3601_v36  ;;  %2353 = vmatprep.subr.mxu1 %v4283_v44 }
 0x42b   :  { %1861 = vadd.xlane.f32.xlu1 %v3830_v59  ;;  %1304 = vmatpush1.msra.mxu0 %v3611_v9  ;;  %v1882_v17 = vmul.f32 %v3830_v59, %v3830_v59 }
 0x42c   :  { %2354 = vmatpush3.msra.mxu1 %v3846_v10  ;;  %1305 = vmatprep.subr.mxu0 %v3618_v43 }
 0x42d   :  { %2355 = vmatprep.subr.mxu1 %v4283_v44  ;;  %1306 = vmatpush1.msra.mxu0 %v3625_v11 }
 0x42e   :  { %2356 = vmatpush3.msra.mxu1 %v3857_v40  ;;  %1307 = vmatprep.subr.mxu0 %v3632_v45 }
 0x42f   :  { %1893 = vadd.xlane.f32.xlu1 %v1882_v17  ;;  %2357 = vmatprep.subr.mxu1 %v4283_v44 }
 0x430   :  { %1308 = vmatpush1.msra.mxu0 %v3639_v14  ;;  %2358 = vmatpush3.msra.mxu1 %v3866_v38 }
 0x431   :  { %1309 = vmatprep.subr.mxu0 %v3646_v46  ;;  %2359 = vmatprep.subr.mxu1 %v4283_v44 }
 0x432   :  { %1310 = vmatpush1.msra.mxu0 %v3653_v15  ;;  %2360 = vmatpush3.msra.mxu1 %v3875_v6 }
 0x433   :  { %1311 = vmatprep.subr.mxu0 %v3660_v47  ;;  %2361 = vmatprep.subr.mxu1 %v4283_v44 }
 0x434   :  { %1312 = vmatpush1.msra.mxu0 %v3667_v16  ;;  %2362 = vmatpush3.msra.mxu1 %v3884_v62 }
 0x435   :  { %1313 = vmatprep.subr.mxu0 %v3674_v48  ;;  %2363 = vmatprep.subr.mxu1 %v4283_v44 }
 0x436   :  { %1314 = vmatpush1.msra.mxu0 %v3681_v18  ;;  %2364 = vmatpush3.msra.mxu1 %v3893_v5 }
 0x437   :  { %1315 = vmatprep.subr.mxu0 %v3688_v49  ;;  %2365 = vmatprep.subr.mxu1 %v4283_v44 }
 0x438   :  { %1316 = vmatpush1.msra.mxu0 %v3695_v21  ;;  %2366 = vmatpush3.msra.mxu1 %v3902_v13 }
 0x439   :  { %1317 = vmatprep.subr.mxu0 %v3702_v50  ;;  %2367 = vmatprep.subr.mxu1 %v4283_v44 }
 0x43a   :  { %1318 = vmatpush1.msra.mxu0 %v3709_v22  ;;  %2368 = vmatpush3.msra.mxu1 %v3911_v55 }
 0x43b   :  { %1319 = vmatprep.subr.mxu0 %v3716_v51  ;;  %2369 = vmatprep.subr.mxu1 %v4283_v44 }
 0x43c   :  { %1320 = vmatpush1.msra.mxu0 %v3723_v25  ;;  %2370 = vmatpush3.msra.mxu1 %v3920_v63 }
 0x43d   :  { %1321 = vmatprep.subr.mxu0 %v3730_v52  ;;  %2371 = vmatprep.subr.mxu1 %v4283_v44 }
 0x43e   :  { %1322 = vmatpush1.msra.mxu0 %v3737_v29  ;;  %2372 = vmatpush3.msra.mxu1 %v3929_v0 }
 0x43f   :  { %1323 = vmatprep.subr.mxu0 %v3744_v53  ;;  %2373 = vmatprep.subr.mxu1 %v4283_v44 }
 0x440   :  { %1324 = vmatpush1.msra.mxu0 %v3751_v30  ;;  %2374 = vmatpush3.msra.mxu1 %v3938_v8 }
 0x441   :  { %1325 = vmatprep.subr.mxu0 %v3758_v54  ;;  %2375 = vmatprep.subr.mxu1 %v4283_v44 }
 0x442   :  { %1326 = vmatpush1.msra.mxu0 %v3765_v31  ;;  %2376 = vmatpush3.msra.mxu1 %v3947_v60 }
 0x443   :  { %1327 = vmatprep.subr.mxu0 %v3772_v2  ;;  %2377 = vmatprep.subr.mxu1 %v4283_v44 }
 0x444   :  { %1328 = vmatpush1.msra.mxu0 %v3779_v33  ;;  %2378 = vmatpush3.msra.mxu1 %v3956_v37 }
 0x445   :  { %1329 = vmatprep.subr.mxu0 %v3786_v19  ;;  %2379 = vmatprep.subr.mxu1 %v4283_v44  ;;  %v4319_v19 = vld [vmem:[#allocation20_spill] sm:$0xff] }
 0x446   :  { %1330 = vmatpush1.msra.mxu0 %v3793_v34  ;;  %1363 = vmatprep.mubr.f32.mxu0 %v4283_v44 }
 0x447   :  { %2380 = vmatpush3.msra.mxu1 %v3966_v35  ;;  %2381 = vmatprep.mubr.msk.f32.mxu1 %vm2604_vm0, %v4283_v44 }
 0x448   :  { %1470 = vmatprep.subr.mxu0 %v3552_v4  ;;  %2384 = vmatprep.subr.mxu1 %v4283_v44 }
 0x4b4   :  { %v1862_v61 = vpop.xlane.xlu1 %1861 }
 0x4b5   :  { %v1874_v39 = vmul.f32 0.03125, %v1862_v61 }
 0x4b7   :  { %v1914_v27 = vmul.f32 %v1874_v39, %v1874_v39  ;;  %v1930_v26 = vsub.f32 %v3830_v59, %v1874_v39 }
 0x4b8   :  { %v1894_v3 = vpop.xlane.xlu1 %1893 }
 0x4b9   :  { %v1906_v41 = vmul.f32 0.03125, %v1894_v3 }
 0x4bb   :  { %v1922_v42 = vsub.f32 %v1906_v41, %v1914_v27 }
 0x4bd   :  { %v1938_v1 = vadd.f32 1e-05, %v1922_v42  ;;  %v4320_v42 = vld [vmem:[#allocation21_spill] sm:$0xff] }
 0x4bf   :  { %2502 = vrsqrt.f32 %v1938_v1 }
 0x4cc   :  { %v2503_v12 = vpop.eup %2502 }
 0x4cd   :  { %v1954_v17 = vmul.f32 %v2503_v12, %v1930_v26 }
 0x4cf   :  { %v1969_v35 = vmul.f32 %v4305_v23, %v1954_v17  ;;  %v4321_v23 = vld [vmem:[#allocation32_spill] sm:$0xff] }
 0x4d1   :  { %v1984_v34 = vadd.f32 %v4306_v28, %v1969_v35 }
 0x4d3   :  { %1992 = vst [vmem:[%s4206_s8 + $0x18] sm:$0xff] %v1984_v34 }
 0x4e6   :  { %v1194_v4 = vpop.f32.mrf.mxu0  ;;  %v1265_v61 = vpop.f32.mrf.mxu1 }
 0x4e7   :  { %v1269_v37 = vadd.f32 %v1194_v4, %v4319_v19  ;;  %v1283_v17 = vadd.f32 %v3366_v24, %v1265_v61 }
 0x4e8   :  { %v2348_v3 = vpop.f32.mrf.mxu1  ;;  %v1196_v41 = vpop.f32.mrf.mxu0 }
 0x4e9   :  { %v2024_v27 = vmul.f32 -1.442695, %v1269_v37  ;;  %v1270_v59 = vadd.f32 %v1196_v41, %v4320_v42 }
 0x4eb   :  { %2504 = vpow2.f32 %v2024_v27  ;;  %v2025_v39 = vmul.f32 -1.442695, %v1270_v59  ;;  %v4323_v59 = vld [vmem:[#allocation3_spill] sm:$0xff] }
 0x4ed   :  { %2506 = vpow2.f32 %v2025_v39  ;;  %v4324_v39 = vld [vmem:[#allocation11_spill] sm:$0xff] }
 0x4f8   :  { %v2505_v1 = vpop.eup %2504 }
 0x4f9   :  { %v1277_v26 = vadd.f32 1.0, %v2505_v1  ;;  %v4325_v1 = vld [vmem:[#allocation6_spill] sm:$0xff] }
 0x4fa   :  { %v2507_v35 = vpop.eup %2506 }
 0x4fb   :  { %2508 = vrcp.f32 %v1277_v26  ;;  %v1278_v12 = vadd.f32 1.0, %v2507_v35  ;;  %v4326_v26 = vld [vmem:[#allocation14_spill] sm:$0xff]  ;;  %v4327_v35 = vld [vmem:[#allocation5_spill] sm:$0xff] }
 0x4fd   :  { %2510 = vrcp.f32 %v1278_v12 }
 0x508   :  { %v2509_v34 = vpop.eup %2508 }
 0x509   :  { %v1284_v28 = vmul.f32 %v2509_v34, %v1283_v17 }
 0x50a   :  { %v2511_v19 = vpop.eup %2510 }
 0x50b   :  { %v1285_v4 = vadd.f32 %v1284_v28, %v4321_v23  ;;  %v1287_v37 = vsub.f32 1.0, %v2511_v19  ;;  %v1289_v41 = vmul.f32 %v2511_v19, %v3813_v32  ;;  %v4322_v28 = vld [vmem:[#allocation33_spill] sm:$0xff] }
 0x50d   :  { %2512 = vtanh.f32 %v1285_v4 }
 0x51a   :  { %v2513_v3 = vpop.eup %2512 }
 0x51b   :  { %v1288_v27 = vmul.f32 %v2513_v3, %v1287_v37 }
 0x51d   :  { %v3984_v42 = vadd.f32 %v1289_v41, %v1288_v27 }
 0x51f   :  { %1364 = vmatmul.mubr.f32.vlgmr.msra.gmra.mxu0 %v3984_v42  ;;  %2382 = vmatmul.mubr.f32.vlgmr.msra.gmra.mxu1 %v3984_v42  ;;  %vm1819_vm5 = vcmp.ge.f32.partialorder %v3984_v42, 0.0  ;;  %v1827_v24 = vmul.f32 0.01, %v3984_v42 }
 0x520   :  { %1471 = vmatpush1.msra.mxu0 %v3576_v57  ;;  %2385 = vmatpush3.msra.mxu1 %v3823_v20 }
 0x521   :  { %v1835_v23 = vsel %vm1819_vm5, %v3984_v42, %v1827_v24  ;;  %1472 = vmatprep.subr.mxu0 %v3584_v58  ;;  %2386 = vmatprep.subr.mxu1 %v4283_v44 }
 0x522   :  { %v3996_v32 = vadd.f32 %v1835_v23, %v4322_v28  ;;  %1473 = vmatpush1.msra.mxu0 %v3594_v7  ;;  %2387 = vmatpush3.msra.mxu1 %v3836_v56  ;;  %v4328_v23 = vld [vmem:[#allocation10_spill] sm:$0xff] }
 0x523   :  { %1474 = vmatprep.subr.mxu0 %v3601_v36  ;;  %2388 = vmatprep.subr.mxu1 %v4283_v44 }
 0x524   :  { %1863 = vadd.xlane.f32.xlu0 %v3996_v32  ;;  %1475 = vmatpush1.msra.mxu0 %v3611_v9  ;;  %v1883_v61 = vmul.f32 %v3996_v32, %v3996_v32 }
 0x525   :  { %2389 = vmatpush3.msra.mxu1 %v3846_v10  ;;  %1476 = vmatprep.subr.mxu0 %v3618_v43 }
 0x526   :  { %2390 = vmatprep.subr.mxu1 %v4283_v44  ;;  %1477 = vmatpush1.msra.mxu0 %v3625_v11 }
 0x527   :  { %2391 = vmatpush3.msra.mxu1 %v3857_v40  ;;  %1478 = vmatprep.subr.mxu0 %v3632_v45 }
 0x528   :  { %1895 = vadd.xlane.f32.xlu0 %v1883_v61  ;;  %2392 = vmatprep.subr.mxu1 %v4283_v44  ;;  %v4329_v61 = vld [vmem:[#allocation4_spill] sm:$0xff] }
 0x529   :  { %1479 = vmatpush1.msra.mxu0 %v3639_v14  ;;  %2393 = vmatpush3.msra.mxu1 %v3866_v38 }
 0x52a   :  { %1480 = vmatprep.subr.mxu0 %v3646_v46  ;;  %2394 = vmatprep.subr.mxu1 %v4283_v44 }
 0x52b   :  { %1481 = vmatpush1.msra.mxu0 %v3653_v15  ;;  %2395 = vmatpush3.msra.mxu1 %v3875_v6 }
 0x52c   :  { %1482 = vmatprep.subr.mxu0 %v3660_v47  ;;  %2396 = vmatprep.subr.mxu1 %v4283_v44 }
 0x52d   :  { %1483 = vmatpush1.msra.mxu0 %v3667_v16  ;;  %2397 = vmatpush3.msra.mxu1 %v3884_v62 }
 0x52e   :  { %1484 = vmatprep.subr.mxu0 %v3674_v48  ;;  %2398 = vmatprep.subr.mxu1 %v4283_v44 }
 0x52f   :  { %1485 = vmatpush1.msra.mxu0 %v3681_v18  ;;  %2399 = vmatpush3.msra.mxu1 %v3893_v5 }
 0x530   :  { %1486 = vmatprep.subr.mxu0 %v3688_v49  ;;  %2400 = vmatprep.subr.mxu1 %v4283_v44 }
 0x531   :  { %1487 = vmatpush1.msra.mxu0 %v3695_v21  ;;  %2401 = vmatpush3.msra.mxu1 %v3902_v13 }
 0x532   :  { %1488 = vmatprep.subr.mxu0 %v3702_v50  ;;  %2402 = vmatprep.subr.mxu1 %v4283_v44 }
 0x533   :  { %1489 = vmatpush1.msra.mxu0 %v3709_v22  ;;  %2403 = vmatpush3.msra.mxu1 %v3911_v55 }
 0x534   :  { %1490 = vmatprep.subr.mxu0 %v3716_v51  ;;  %2404 = vmatprep.subr.mxu1 %v4283_v44 }
 0x535   :  { %1491 = vmatpush1.msra.mxu0 %v3723_v25  ;;  %2405 = vmatpush3.msra.mxu1 %v3920_v63 }
 0x536   :  { %1492 = vmatprep.subr.mxu0 %v3730_v52  ;;  %2406 = vmatprep.subr.mxu1 %v4283_v44 }
 0x537   :  { %1493 = vmatpush1.msra.mxu0 %v3737_v29  ;;  %2407 = vmatpush3.msra.mxu1 %v3929_v0 }
 0x538   :  { %1494 = vmatprep.subr.mxu0 %v3744_v53  ;;  %2408 = vmatprep.subr.mxu1 %v4283_v44 }
 0x539   :  { %1495 = vmatpush1.msra.mxu0 %v3751_v30  ;;  %2409 = vmatpush3.msra.mxu1 %v3938_v8 }
 0x53a   :  { %1496 = vmatprep.subr.mxu0 %v3758_v54  ;;  %2410 = vmatprep.subr.mxu1 %v4283_v44 }
 0x53b   :  { %1497 = vmatpush1.msra.mxu0 %v3765_v31  ;;  %2411 = vmatpush3.msra.mxu1 %v3947_v60 }
 0x53c   :  { %1498 = vmatprep.subr.mxu0 %v3772_v2  ;;  %2412 = vmatprep.subr.mxu1 %v4283_v44 }
 0x53d   :  { %1499 = vmatpush1.msra.mxu0 %v3779_v33  ;;  %2413 = vmatpush3.msra.mxu1 %v4323_v59 }
 0x53e   :  { %1500 = vmatprep.subr.mxu0 %v4324_v39  ;;  %2414 = vmatprep.subr.mxu1 %v4283_v44 }
 0x53f   :  { %1501 = vmatpush1.msra.mxu0 %v4325_v1  ;;  %1534 = vmatprep.mubr.f32.mxu0 %v4283_v44  ;;  %v4330_v1 = vld [vmem:[#allocation22_spill] sm:$0xff] }
 0x540   :  { %2415 = vmatpush3.msra.mxu1 %v4326_v26  ;;  %2416 = vmatprep.mubr.msk.f32.mxu1 %vm2604_vm0, %v4283_v44 }
 0x541   :  { %1641 = vmatprep.subr.mxu0 %v4327_v35  ;;  %2419 = vmatprep.subr.mxu1 %v4283_v44 }
 0x5ad   :  { %v1864_v12 = vpop.xlane.xlu0 %1863 }
 0x5ae   :  { %v1875_v17 = vmul.f32 0.03125, %v1864_v12 }
 0x5b0   :  { %v1915_v4 = vmul.f32 %v1875_v17, %v1875_v17  ;;  %v1931_v27 = vsub.f32 %v3996_v32, %v1875_v17 }
 0x5b1   :  { %v1896_v34 = vpop.xlane.xlu0 %1895 }
 0x5b2   :  { %v1907_v19 = vmul.f32 0.03125, %v1896_v34 }
 0x5b4   :  { %v1923_v37 = vsub.f32 %v1907_v19, %v1915_v4 }
 0x5b6   :  { %v1939_v3 = vadd.f32 1e-05, %v1923_v37  ;;  %v4331_v37 = vld [vmem:[#allocation23_spill] sm:$0xff] }
 0x5b8   :  { %2514 = vrsqrt.f32 %v1939_v3 }
 0x5c5   :  { %v2515_v41 = vpop.eup %2514 }
 0x5c6   :  { %v1955_v24 = vmul.f32 %v2515_v41, %v1931_v27 }
 0x5c8   :  { %v1970_v28 = vmul.f32 %v4328_v23, %v1955_v24 }
 0x5ca   :  { %v1985_v26 = vadd.f32 %v4329_v61, %v1970_v28  ;;  %v4332_v28 = vld [vmem:[#allocation34_spill] sm:$0xff] }
 0x5cc   :  { %1993 = vst [vmem:[%s4206_s8 + $0x20] sm:$0xff] %v1985_v26  ;;  %v4075_v26 = vld [vmem:[%s4203_s4] ss:$0 sm:$0xff] }
 0x5df   :  { %v1365_v35 = vpop.f32.mrf.mxu0  ;;  %v1436_v12 = vpop.f32.mrf.mxu1 }
 0x5e0   :  { %v1440_v39 = vadd.f32 %v1365_v35, %v4330_v1  ;;  %v1454_v1 = vadd.f32 %v4075_v26, %v1436_v12 }
 0x5e1   :  { %v2383_v34 = vpop.f32.mrf.mxu1  ;;  %v1367_v19 = vpop.f32.mrf.mxu0 }
 0x5e2   :  { %v2027_v4 = vmul.f32 -1.442695, %v1440_v39  ;;  %v1441_v32 = vadd.f32 %v1367_v19, %v4331_v37 }
 0x5e4   :  { %2516 = vpow2.f32 %v2027_v4  ;;  %v2028_v17 = vmul.f32 -1.442695, %v1441_v32 }
 0x5e6   :  { %2518 = vpow2.f32 %v2028_v17 }
 0x5f1   :  { %v2517_v3 = vpop.eup %2516 }
 0x5f2   :  { %v1448_v27 = vadd.f32 1.0, %v2517_v3 }
 0x5f3   :  { %v2519_v41 = vpop.eup %2518 }
 0x5f4   :  { %2520 = vrcp.f32 %v1448_v27  ;;  %v1449_v24 = vadd.f32 1.0, %v2519_v41  ;;  %v4340_v27 = vld [vmem:[#allocation37_spill] sm:$0xff] }
 0x5f6   :  { %2522 = vrcp.f32 %v1449_v24 }
 0x601   :  { %v2521_v23 = vpop.eup %2520 }
 0x602   :  { %v1455_v39 = vmul.f32 %v2521_v23, %v1454_v1 }
 0x603   :  { %v2523_v35 = vpop.eup %2522 }
 0x604   :  { %v1456_v61 = vadd.f32 %v1455_v39, %v4332_v28  ;;  %v1458_v34 = vsub.f32 1.0, %v2523_v35  ;;  %v1460_v37 = vmul.f32 %v2523_v35, %v3984_v42  ;;  %v4333_v42 = vld [vmem:[#allocation35_spill] sm:$0xff] }
 0x606   :  { %2524 = vtanh.f32 %v1456_v61 }
 0x613   :  { %v2525_v4 = vpop.eup %2524 }
 0x614   :  { %v1459_v19 = vmul.f32 %v2525_v4, %v1458_v34 }
 0x616   :  { %v4080_v32 = vadd.f32 %v1460_v37, %v1459_v19 }
 0x618   :  { %1535 = vmatmul.mubr.f32.vlgmr.msra.gmra.mxu0 %v4080_v32  ;;  %2417 = vmatmul.mubr.f32.vlgmr.msra.gmra.mxu1 %v4080_v32  ;;  %vm1820_vm6 = vcmp.ge.f32.partialorder %v4080_v32, 0.0  ;;  %v1828_v12 = vmul.f32 0.01, %v4080_v32 }
 0x619   :  { %1642 = vmatpush1.msra.mxu0 %v3576_v57  ;;  %2420 = vmatpush3.msra.mxu1 %v3823_v20 }
 0x61a   :  { %v1836_v17 = vsel %vm1820_vm6, %v4080_v32, %v1828_v12  ;;  %1643 = vmatprep.subr.mxu0 %v3584_v58  ;;  %2421 = vmatprep.subr.mxu1 %v4283_v44  ;;  %v4334_v58 = vld [vmem:[#allocation11_spill] sm:$0xff] }
 0x61b   :  { %v4092_v3 = vadd.f32 %v1836_v17, %v4333_v42  ;;  %1644 = vmatpush1.msra.mxu0 %v3594_v7  ;;  %2422 = vmatpush3.msra.mxu1 %v3836_v56  ;;  %v4335_v7 = vld [vmem:[#allocation6_spill] sm:$0xff] }
 0x61c   :  { %1645 = vmatprep.subr.mxu0 %v3601_v36  ;;  %2423 = vmatprep.subr.mxu1 %v4283_v44  ;;  %v4336_v36 = vld [vmem:[#allocation14_spill] sm:$0xff] }
 0x61d   :  { %1865 = vadd.xlane.f32.xlu1 %v4092_v3  ;;  %1646 = vmatpush1.msra.mxu0 %v3611_v9  ;;  %v1884_v57 = vmul.f32 %v4092_v3, %v4092_v3 }
 0x61e   :  { %2424 = vmatpush3.msra.mxu1 %v3846_v10  ;;  %1647 = vmatprep.subr.mxu0 %v3618_v43 }
 0x61f   :  { %2425 = vmatprep.subr.mxu1 %v4283_v44  ;;  %1648 = vmatpush1.msra.mxu0 %v3625_v11 }
 0x620   :  { %2426 = vmatpush3.msra.mxu1 %v3857_v40  ;;  %1649 = vmatprep.subr.mxu0 %v3632_v45 }
 0x621   :  { %1897 = vadd.xlane.f32.xlu1 %v1884_v57  ;;  %2427 = vmatprep.subr.mxu1 %v4283_v44 }
 0x622   :  { %1650 = vmatpush1.msra.mxu0 %v3639_v14  ;;  %2428 = vmatpush3.msra.mxu1 %v3866_v38 }
 0x623   :  { %1651 = vmatprep.subr.mxu0 %v3646_v46  ;;  %2429 = vmatprep.subr.mxu1 %v4283_v44 }
 0x624   :  { %1652 = vmatpush1.msra.mxu0 %v3653_v15  ;;  %2430 = vmatpush3.msra.mxu1 %v3875_v6  ;;  %v4339_v6 = vld [vmem:[#allocation36_spill] sm:$0xff] }
 0x625   :  { %1653 = vmatprep.subr.mxu0 %v3660_v47  ;;  %2431 = vmatprep.subr.mxu1 %v4283_v44 }
 0x626   :  { %1654 = vmatpush1.msra.mxu0 %v3667_v16  ;;  %2432 = vmatpush3.msra.mxu1 %v3884_v62 }
 0x627   :  { %1655 = vmatprep.subr.mxu0 %v3674_v48  ;;  %2433 = vmatprep.subr.mxu1 %v4283_v44 }
 0x628   :  { %1656 = vmatpush1.msra.mxu0 %v3681_v18  ;;  %2434 = vmatpush3.msra.mxu1 %v3893_v5  ;;  %v4162_v18 = vld [vmem:[%s4204_s5] ss:$0 sm:$0xff] }
 0x629   :  { %1657 = vmatprep.subr.mxu0 %v3688_v49  ;;  %2435 = vmatprep.subr.mxu1 %v4283_v44 }
 0x62a   :  { %1658 = vmatpush1.msra.mxu0 %v3695_v21  ;;  %2436 = vmatpush3.msra.mxu1 %v3902_v13 }
 0x62b   :  { %1659 = vmatprep.subr.mxu0 %v3702_v50  ;;  %2437 = vmatprep.subr.mxu1 %v4283_v44 }
 0x62c   :  { %1660 = vmatpush1.msra.mxu0 %v3709_v22  ;;  %2438 = vmatpush3.msra.mxu1 %v3911_v55 }
 0x62d   :  { %1661 = vmatprep.subr.mxu0 %v3716_v51  ;;  %2439 = vmatprep.subr.mxu1 %v4283_v44  ;;  %v4337_v51 = vld [vmem:[#allocation24_spill] sm:$0xff] }
 0x62e   :  { %1662 = vmatpush1.msra.mxu0 %v3723_v25  ;;  %2440 = vmatpush3.msra.mxu1 %v3920_v63 }
 0x62f   :  { %1663 = vmatprep.subr.mxu0 %v3730_v52  ;;  %2441 = vmatprep.subr.mxu1 %v4283_v44 }
 0x630   :  { %1664 = vmatpush1.msra.mxu0 %v3737_v29  ;;  %2442 = vmatpush3.msra.mxu1 %v3929_v0 }
 0x631   :  { %1665 = vmatprep.subr.mxu0 %v3744_v53  ;;  %2443 = vmatprep.subr.mxu1 %v4283_v44 }
 0x632   :  { %1666 = vmatpush1.msra.mxu0 %v3751_v30  ;;  %2444 = vmatpush3.msra.mxu1 %v3938_v8  ;;  %v4338_v30 = vld [vmem:[#allocation25_spill] sm:$0xff] }
 0x633   :  { %1667 = vmatprep.subr.mxu0 %v3758_v54  ;;  %2445 = vmatprep.subr.mxu1 %v4283_v44 }
 0x634   :  { %1668 = vmatpush1.msra.mxu0 %v3765_v31  ;;  %2446 = vmatpush3.msra.mxu1 %v3947_v60 }
 0x635   :  { %1669 = vmatprep.subr.mxu0 %v3772_v2  ;;  %2447 = vmatprep.subr.mxu1 %v4283_v44 }
 0x636   :  { %1670 = vmatpush1.msra.mxu0 %v3779_v33  ;;  %2448 = vmatpush3.msra.mxu1 %v4323_v59 }
 0x637   :  { %1671 = vmatprep.subr.mxu0 %v4334_v58  ;;  %2449 = vmatprep.subr.mxu1 %v4283_v44 }
 0x638   :  { %1672 = vmatpush1.msra.mxu0 %v4335_v7  ;;  %1705 = vmatprep.mubr.f32.mxu0 %v4283_v44 }
 0x639   :  { %2450 = vmatpush3.msra.mxu1 %v4336_v36  ;;  %2451 = vmatprep.mubr.msk.f32.mxu1 %vm2604_vm0, %v4283_v44  ;;  %v4168_v44 = vld [vmem:[%s4205_s6] ss:$0 sm:$0xff] }
 0x6a6   :  { %v1866_v9 = vpop.xlane.xlu1 %1865 }
 0x6a7   :  { %v1876_v43 = vmul.f32 0.03125, %v1866_v9  ;;  %v4342_v9 = vld [vmem:[#allocation27_spill] sm:$0xff] }
 0x6a9   :  { %v1916_v45 = vmul.f32 %v1876_v43, %v1876_v43  ;;  %v1932_v47 = vsub.f32 %v4092_v3, %v1876_v43  ;;  %v4341_v3 = vld [vmem:[#allocation26_spill] sm:$0xff] }
 0x6aa   :  { %v1898_v11 = vpop.xlane.xlu1 %1897 }
 0x6ab   :  { %v1908_v14 = vmul.f32 0.03125, %v1898_v11 }
 0x6ad   :  { %v1924_v46 = vsub.f32 %v1908_v14, %v1916_v45 }
 0x6af   :  { %v1940_v15 = vadd.f32 1e-05, %v1924_v46 }
 0x6b1   :  { %2526 = vrsqrt.f32 %v1940_v15 }
 0x6be   :  { %v2527_v16 = vpop.eup %2526 }
 0x6bf   :  { %v1956_v48 = vmul.f32 %v2527_v16, %v1932_v47 }
 0x6c1   :  { %v1971_v49 = vmul.f32 %v4162_v18, %v1956_v48 }
 0x6c3   :  { %v1986_v21 = vadd.f32 %v4168_v44, %v1971_v49  ;;  %v4343_v49 = vld [vmem:[#allocation38_spill] sm:$0xff] }
 0x6c5   :  { %1994 = vst [vmem:[%s4206_s8 + $0x28] sm:$0xff] %v1986_v21 }
 0x6d8   :  { %v1536_v50 = vpop.f32.mrf.mxu0  ;;  %v1607_v22 = vpop.f32.mrf.mxu1 }
 0x6d9   :  { %v1611_v25 = vadd.f32 %v1536_v50, %v4337_v51  ;;  %v1625_v10 = vadd.f32 %v4075_v26, %v1607_v22 }
 0x6da   :  { %v2418_v52 = vpop.f32.mrf.mxu1  ;;  %v1538_v53 = vpop.f32.mrf.mxu0 }
 0x6db   :  { %v2030_v29 = vmul.f32 -1.442695, %v1611_v25  ;;  %v1612_v54 = vadd.f32 %v1538_v53, %v4338_v30 }
 0x6dd   :  { %2528 = vpow2.f32 %v2030_v29  ;;  %v2031_v31 = vmul.f32 -1.442695, %v1612_v54 }
 0x6df   :  { %2530 = vpow2.f32 %v2031_v31 }
 0x6ea   :  { %v2529_v2 = vpop.eup %2528 }
 0x6eb   :  { %v1619_v33 = vadd.f32 1.0, %v2529_v2 }
 0x6ec   :  { %v2531_v20 = vpop.eup %2530 }
 0x6ed   :  { %2532 = vrcp.f32 %v1619_v33  ;;  %v1620_v56 = vadd.f32 1.0, %v2531_v20 }
 0x6ef   :  { %2534 = vrcp.f32 %v1620_v56 }
 0x6fa   :  { %v2533_v40 = vpop.eup %2532 }
 0x6fb   :  { %v1626_v38 = vmul.f32 %v2533_v40, %v1625_v10 }
 0x6fc   :  { %v2535_v5 = vpop.eup %2534 }
 0x6fd   :  { %v1627_v62 = vadd.f32 %v1626_v38, %v4339_v6  ;;  %v1629_v13 = vsub.f32 1.0, %v2535_v5  ;;  %v1631_v0 = vmul.f32 %v2535_v5, %v4080_v32 }
 0x6ff   :  { %2536 = vtanh.f32 %v1627_v62 }
 0x70c   :  { %v2537_v55 = vpop.eup %2536 }
 0x70d   :  { %v1630_v63 = vmul.f32 %v2537_v55, %v1629_v13 }
 0x70f   :  { %v1632_v8 = vadd.f32 %v1631_v0, %v1630_v63 }
 0x711   :  { %1706 = vmatmul.mubr.f32.vlgmr.msra.gmra.mxu0 %v1632_v8  ;;  %2452 = vmatmul.mubr.f32.vlgmr.msra.gmra.mxu1 %v1632_v8  ;;  %vm1821_vm7 = vcmp.ge.f32.partialorder %v1632_v8, 0.0  ;;  %v1829_v60 = vmul.f32 0.01, %v1632_v8 }
 0x713   :  { %v1837_v59 = vsel %vm1821_vm7, %v1632_v8, %v1829_v60 }
 0x714   :  { %v1853_v41 = vadd.f32 %v1837_v59, %v4340_v27 }
 0x716   :  { %1867 = vadd.xlane.f32.xlu0 %v1853_v41  ;;  %v1885_v24 = vmul.f32 %v1853_v41, %v1853_v41 }
 0x71a   :  { %1899 = vadd.xlane.f32.xlu0 %v1885_v24 }
 0x79f   :  { %v1868_v1 = vpop.xlane.xlu0 %1867 }
 0x7a0   :  { %v1877_v23 = vmul.f32 0.03125, %v1868_v1 }
 0x7a2   :  { %v1917_v28 = vmul.f32 %v1877_v23, %v1877_v23  ;;  %v1933_v4 = vsub.f32 %v1853_v41, %v1877_v23 }
 0x7a3   :  { %v1900_v39 = vpop.xlane.xlu0 %1899 }
 0x7a4   :  { %v1909_v61 = vmul.f32 0.03125, %v1900_v39 }
 0x7a6   :  { %v1925_v35 = vsub.f32 %v1909_v61, %v1917_v28 }
 0x7a8   :  { %v1941_v34 = vadd.f32 1e-05, %v1925_v35 }
 0x7aa   :  { %2538 = vrsqrt.f32 %v1941_v34 }
 0x7b7   :  { %v2539_v19 = vpop.eup %2538 }
 0x7b8   :  { %v1957_v37 = vmul.f32 %v2539_v19, %v1933_v4 }
 0x7ba   :  { %v1972_v32 = vmul.f32 %v4162_v18, %v1957_v37 }
 0x7bc   :  { %v1987_v12 = vadd.f32 %v4168_v44, %v1972_v32 }
 0x7be   :  { %1995 = vst [vmem:[%s4206_s8 + $0x30] sm:$0xff] %v1987_v12 }
 0x7d1   :  { %v1707_v17 = vpop.f32.mrf.mxu0  ;;  %v1778_v42 = vpop.f32.mrf.mxu1 }
 0x7d2   :  { %v1782_v57 = vadd.f32 %v1707_v17, %v4341_v3  ;;  %v1796_v47 = vadd.f32 %v4075_v26, %v1778_v42  ;;  %v4344_v26 = vld [vmem:[#allocation39_spill] sm:$0xff] }
 0x7d3   :  { %v2453_v58 = vpop.f32.mrf.mxu1  ;;  %v1709_v36 = vpop.f32.mrf.mxu0 }
 0x7d4   :  { %v2033_v7 = vmul.f32 -1.442695, %v1782_v57  ;;  %v1783_v43 = vadd.f32 %v1709_v36, %v4342_v9 }
 0x7d6   :  { %2540 = vpow2.f32 %v2033_v7  ;;  %v2034_v11 = vmul.f32 -1.442695, %v1783_v43 }
 0x7d8   :  { %2542 = vpow2.f32 %v2034_v11 }
 0x7e3   :  { %v2541_v45 = vpop.eup %2540 }
 0x7e4   :  { %v1790_v14 = vadd.f32 1.0, %v2541_v45 }
 0x7e5   :  { %v2543_v46 = vpop.eup %2542 }
 0x7e6   :  { %2544 = vrcp.f32 %v1790_v14  ;;  %v1791_v15 = vadd.f32 1.0, %v2543_v46 }
 0x7e8   :  { %2546 = vrcp.f32 %v1791_v15 }
 0x7f3   :  { %v2545_v16 = vpop.eup %2544 }
 0x7f4   :  { %v1797_v48 = vmul.f32 %v2545_v16, %v1796_v47 }
 0x7f5   :  { %v2547_v50 = vpop.eup %2546 }
 0x7f6   :  { %v1798_v21 = vadd.f32 %v1797_v48, %v4343_v49  ;;  %v1800_v22 = vsub.f32 1.0, %v2547_v50  ;;  %v1802_v52 = vmul.f32 %v2547_v50, %v1632_v8 }
 0x7f8   :  { %2548 = vtanh.f32 %v1798_v21 }
 0x805   :  { %v2549_v51 = vpop.eup %2548 }
 0x806   :  { %v1801_v25 = vmul.f32 %v2549_v51, %v1800_v22 }
 0x808   :  { %v1803_v29 = vadd.f32 %v1802_v52, %v1801_v25 }
 0x80a   :  { %1806 = vst [vmem:[%s4207_s9] sm:$0xff] %v1803_v29  ;;  %vm1822_vm8 = vcmp.ge.f32.partialorder %v1803_v29, 0.0  ;;  %v1830_v53 = vmul.f32 0.01, %v1803_v29 }
 0x80c   :  { %v1838_v30 = vsel %vm1822_vm8, %v1803_v29, %v1830_v53 }
 0x80d   :  { %v1854_v54 = vadd.f32 %v1838_v30, %v4344_v26 }
 0x80f   :  { %1869 = vadd.xlane.f32.xlu1 %v1854_v54  ;;  %v1886_v31 = vmul.f32 %v1854_v54, %v1854_v54 }
 0x813   :  { %1901 = vadd.xlane.f32.xlu1 %v1886_v31 }
 0x898   :  { %v1870_v2 = vpop.xlane.xlu1 %1869 }
 0x899   :  { %v1878_v33 = vmul.f32 0.03125, %v1870_v2 }
 0x89b   :  { %v1918_v56 = vmul.f32 %v1878_v33, %v1878_v33  ;;  %v1934_v6 = vsub.f32 %v1854_v54, %v1878_v33 }
 0x89c   :  { %v1902_v20 = vpop.xlane.xlu1 %1901 }
 0x89d   :  { %v1910_v10 = vmul.f32 0.03125, %v1902_v20 }
 0x89f   :  { %v1926_v40 = vsub.f32 %v1910_v10, %v1918_v56 }
 0x8a1   :  { %v1942_v38 = vadd.f32 1e-05, %v1926_v40 }
 0x8a3   :  { %2550 = vrsqrt.f32 %v1942_v38 }
 0x8b0   :  { %v2551_v62 = vpop.eup %2550 }
 0x8b1   :  { %v1958_v5 = vmul.f32 %v2551_v62, %v1934_v6 }
 0x8b3   :  { %v1973_v13 = vmul.f32 %v4162_v18, %v1958_v5 }
 0x8b5   :  { %v1988_v55 = vadd.f32 %v4168_v44, %v1973_v13 }
 0x8b7   :  { %1996 = vst [vmem:[%s4206_s8 + $0x38] sm:$0xff] %v1988_v55 }

</bundles_post_ra>
